<compile_context>
chip_gen: v5e
topology: v5e:2x2
jax: 0.10.0
libtpu: 0.0.40
codegen_flags: <defaults>
</compile_context>

<pallas_src>
import jax
import jax.numpy as jnp
from jax import lax
from jax.experimental import pallas as pl
from jax.experimental.pallas import tpu as pltpu

# ---------------- config (small, consistent with the module) ----------------
B = 2                # batch
S = 16               # max_seq_len
H = 32               # albert hidden_size
LSTM_HIDDEN = 16
F = 2 * LSTM_HIDDEN  # IDCNN filters = lstm_hidden * 2 = 32
T = 8                # num_tags
VOCAB = 50
KERNEL = 3
LN_EPS = 1e-5
DILATIONS = (1, 1, 2)    # IDCNN layers: dilation 1, 1, 2
N = B * S                # flattened token rows

# Row-tile grid: each grid step handles SEQS_PER_TILE whole sequences so the
# dilated-conv shifts stay inside a tile.  At realistic ALBERT sizes raise
# SEQS_PER_TILE until ~256-512 rows/tile (sublane multiple) for the pipeline.
SEQS_PER_TILE = 1
assert B % SEQS_PER_TILE == 0
ROWS = SEQS_PER_TILE * S            # rows per grid step (sublane multiple)
GRID_STEPS = B // SEQS_PER_TILE


# ---------------- in-kernel helpers ------------------------------------------
def _layernorm(x):
    """LayerNorm over channels (last dim), elementwise_affine=False (f32)."""
    mu = jnp.mean(x, axis=-1, keepdims=True)
    var = jnp.mean((x - mu) ** 2, axis=-1, keepdims=True)
    return (x - mu) * lax.rsqrt(var + LN_EPS)


# ---------------- fused kernel: IDCNN + classifier + masked CE loss ----------
def fused_kernel(x_ref, labels_ref, mask_ref,
                 wlin_ref, blin_ref,
                 w0_ref, b0_ref, w1_ref, b1_ref, w2_ref, b2_ref,
                 wcls_ref, bcls_ref,
                 logits_ref, loss_ref,
                 acc_ref):
    step = pl.program_id(0)
    last = pl.num_programs(0) - 1

    @pl.when(step == 0)
    def _():
        acc_ref[0] = 0.0                      # running masked-NLL sum
        acc_ref[1] = 0.0                      # running active-token count
        loss_ref[...] = jnp.zeros_like(loss_ref)

    x = x_ref[...]                            # (ROWS, H) f32

    # Hoist weight loads (weights arrive pre-cast to bf16; biases are f32).
    wlin, blin = wlin_ref[...], blin_ref[...]
    w0, b0 = w0_ref[...], b0_ref[...]
    w1, b1 = w1_ref[...], b1_ref[...]
    w2, b2 = w2_ref[...], b2_ref[...]
    wcls, bcls = wcls_ref[...], bcls_ref[...]

    # Hoisted shift-validity masks: one iota, pre-broadcast to full (ROWS, F)
    # f32 multipliers so every conv call is just roll * mask (no re-broadcast,
    # no where).  Row t may read row t+off only if the source stays inside the
    # same sequence (handles zero padding AND the flattened batch boundary).
    pos = lax.broadcasted_iota(jnp.int32, (ROWS, 1), 0) % S
    offsets = sorted({d for d in DILATIONS} | {-d for d in DILATIONS})
    valid_f = {
        off: jnp.broadcast_to(
            ((pos + off >= 0) & (pos + off < S)).astype(jnp.float32), (ROWS, F))
        for off in offsets
    }
    zero_tap = jnp.zeros((ROWS, F), jnp.float32)   # 4th (padding) tap -> 128 lanes

    def shift(h, off):
        # result[t] = h[t + off] (zero outside the sequence / across batches)
        rolled = pltpu.roll(h, shift=(-off) % ROWS, axis=0)   # XLU slot
        return rolled * valid_f[off]                          # VPU, f32

    def conv(h, w_fused, b, d):
        # taps fused into a single MXU push: (ROWS, 4F=128) @ (128, F)
        xk = jnp.concatenate([shift(h, -d), h, shift(h, d), zero_tap], axis=-1)
        out = jnp.dot(xk.astype(jnp.bfloat16), w_fused,
                      preferred_element_type=jnp.float32)
        return out + b

    # `net` after nn.Sequential name-collision semantics:
    #   layer0 -> ReLU -> LayerNorm -> layer1 -> layer2
    def block(h):
        h = conv(h, w0, b0, DILATIONS[0])
        h = jnp.maximum(h, 0.0)
        h = _layernorm(h)
        h = conv(h, w1, b1, DILATIONS[1])
        h = conv(h, w2, b2, DILATIONS[2])
        return h

    # IDCNN.linear : (ROWS, H) @ (H, F)
    h = jnp.dot(x.astype(jnp.bfloat16), wlin,
                preferred_element_type=jnp.float32) + blin

    # self.idcnn after name-collision semantics (blocks share weights):
    #   block0 -> ReLU -> LayerNorm -> block1 -> block2 -> block3
    h = block(h)
    h = jnp.maximum(h, 0.0)
    h = _layernorm(h)
    h = block(h)
    h = block(h)
    h = block(h)

    # AlbertNerModel.linear : (ROWS, F) @ (F, T)
    logits = jnp.dot(h.astype(jnp.bfloat16), wcls,
                     preferred_element_type=jnp.float32) + bcls
    logits_ref[...] = logits.astype(logits_ref.dtype)

    # Masked token-level cross entropy: per-tile partial sums in SMEM scratch.
    m = jnp.max(logits, axis=-1, keepdims=True)
    z = logits - m
    lse = jnp.log(jnp.sum(jnp.exp(z), axis=-1, keepdims=True))
    logp = z - lse                                                   # (ROWS, T)
    onehot = (lax.broadcasted_iota(jnp.int32, logits.shape, 1)
              == labels_ref[...]).astype(jnp.float32)                # (ROWS, T)
    nll = -jnp.sum(logp * onehot, axis=-1, keepdims=True)            # (ROWS, 1)
    active = (mask_ref[...] == 1).astype(jnp.float32)                # (ROWS, 1)
    acc_ref[0] += jnp.sum(nll * active)
    acc_ref[1] += jnp.sum(active)

    @pl.when(step == last)
    def _():
        total = acc_ref[0]
        count = jnp.maximum(acc_ref[1], 1.0)   # guard: all-masked batch
        # Lane-dense scalar writeback: full (8,128) slab, wrapper reads [0,0].
        loss_ref[...] = jnp.zeros_like(loss_ref) + total / count


# ---------------- wrapper -----------------------------------------------------
def albert_ner_forward(params, token_ids, attention_masks, token_type_ids, labels):
    # TODO(synk): stand-in for the pretrained ALBERT encoder output [0].
    del token_type_ids
    seq_out = params["emb"][token_ids]                       # (B, S, H) f32

    x = seq_out.reshape(N, H)
    labels2 = labels.reshape(N, 1).astype(jnp.int32)
    mask2 = attention_masks.reshape(N, 1).astype(jnp.int32)

    # Tap-fused conv weights padded to a full 128-lane contraction:
    # (K, F_in, F_out) + zero tap -> (4*F_in, F_out); cast to bf16 once here.
    def fuse(w):
        wp = jnp.concatenate([w, jnp.zeros((1, F, F), w.dtype)], axis=0)
        return wp.reshape(4 * F, F).astype(jnp.bfloat16)

    w_fused = [fuse(w) for w in params["conv_w"]]
    wlin_bf = params["wlin"].astype(jnp.bfloat16)
    wcls_bf = params["wcls"].astype(jnp.bfloat16)

    row2 = lambda i: (i, 0)     # row-tiled arrays
    rep2 = lambda i: (0, 0)     # weights resident across grid steps

    logits_flat, loss_slab = pl.pallas_call(
        fused_kernel,
        out_shape=(jax.ShapeDtypeStruct((N, T), jnp.float32),
                   jax.ShapeDtypeStruct((8, 128), jnp.float32)),
        grid_spec=pltpu.PrefetchScalarGridSpec(
            num_scalar_prefetch=0,
            grid=(GRID_STEPS,),
            in_specs=[
                pl.BlockSpec((ROWS, H), row2),       # x
                pl.BlockSpec((ROWS, 1), row2),       # labels
                pl.BlockSpec((ROWS, 1), row2),       # attention mask
                pl.BlockSpec((H, F), rep2),          # wlin (bf16)
                pl.BlockSpec((1, F), rep2),          # blin
                pl.BlockSpec((4 * F, F), rep2),      # conv0 w (bf16, tap-fused)
                pl.BlockSpec((1, F), rep2),          # conv0 b
                pl.BlockSpec((4 * F, F), rep2),      # conv1 w
                pl.BlockSpec((1, F), rep2),          # conv1 b
                pl.BlockSpec((4 * F, F), rep2),      # conv2 w
                pl.BlockSpec((1, F), rep2),          # conv2 b
                pl.BlockSpec((F, T), rep2),          # wcls (bf16)
                pl.BlockSpec((1, T), rep2),          # bcls
            ],
            out_specs=(pl.BlockSpec((ROWS, T), row2),
                       pl.BlockSpec((8, 128), rep2)),
            scratch_shapes=[pltpu.SMEM((2,), jnp.float32)]),
        compiler_params=pltpu.CompilerParams(
            dimension_semantics=("arbitrary",)),     # loss accumulator crosses steps
    )(x, labels2, mask2,
      wlin_bf, params["blin"],
      w_fused[0], params["conv_b"][0],
      w_fused[1], params["conv_b"][1],
      w_fused[2], params["conv_b"][2],
      wcls_bf, params["bcls"])

    logits = logits_flat.reshape(B, S, T)
    return loss_slab[0, 0], logits               # == (loss,) + (logits,)


def init_params(key):
    ks = jax.random.split(key, 8)
    std = 0.02
    p = {
        "emb": jax.random.normal(ks[0], (VOCAB, H), jnp.float32) * std,
        # IDCNN.linear: weight stored pre-transposed (H, F); bias zero-init
        "wlin": jax.random.normal(ks[1], (H, F), jnp.float32) * std,
        "blin": jnp.zeros((1, F), jnp.float32),
        # Conv1d weights: torch (F_out, F_in, K) stored as (K, F_in, F_out) taps
        "conv_w": [jax.random.normal(ks[2 + i], (KERNEL, F, F), jnp.float32) * std
                   for i in range(3)],
        "conv_b": [jnp.zeros((1, F), jnp.float32) for _ in range(3)],
        # AlbertNerModel.linear: (F, T), bias zero (per _init_weights)
        "wcls": jax.random.normal(ks[5], (F, T), jnp.float32) * std,
        "bcls": jnp.zeros((1, T), jnp.float32),
    }
    return p


if __name__ == "__main__":
    key = jax.random.PRNGKey(0)
    kp, kt, kl = jax.random.split(key, 3)
    params = init_params(kp)

    token_ids = jax.random.randint(kt, (B, S), 0, VOCAB, dtype=jnp.int32)
    token_type_ids = jnp.zeros((B, S), jnp.int32)
    lengths = jnp.array([S, S - 4], jnp.int32)
    attention_masks = (jnp.arange(S)[None, :] < lengths[:, None]).astype(jnp.int32)
    labels = jax.random.randint(kl, (B, S), 0, T, dtype=jnp.int32)

    loss, logits = jax.jit(albert_ner_forward)(
        params, token_ids, attention_masks, token_type_ids, labels)
    jax.block_until_ready((loss, logits))
    assert logits.shape == (B, S, T)
    assert jnp.isfinite(loss)
    print("KERNEL_OK")
</pallas_src>

<mosaic_0001>
module attributes {stable_mosaic.version = 11 : i64} {
  func.func @fused_kernel(%arg0: i32, %arg1: memref<16x32xf32, #tpu.memory_space<vmem>>, %arg2: memref<16x1xi32, #tpu.memory_space<vmem>>, %arg3: memref<16x1xi32, #tpu.memory_space<vmem>>, %arg4: memref<32x32xbf16, #tpu.memory_space<vmem>>, %arg5: memref<1x32xf32, #tpu.memory_space<vmem>>, %arg6: memref<128x32xbf16, #tpu.memory_space<vmem>>, %arg7: memref<1x32xf32, #tpu.memory_space<vmem>>, %arg8: memref<128x32xbf16, #tpu.memory_space<vmem>>, %arg9: memref<1x32xf32, #tpu.memory_space<vmem>>, %arg10: memref<128x32xbf16, #tpu.memory_space<vmem>>, %arg11: memref<1x32xf32, #tpu.memory_space<vmem>>, %arg12: memref<32x8xbf16, #tpu.memory_space<vmem>>, %arg13: memref<1x8xf32, #tpu.memory_space<vmem>>, %arg14: memref<16x8xf32, #tpu.memory_space<vmem>>, %arg15: memref<8x128xf32, #tpu.memory_space<vmem>>, %arg16: memref<2xf32, #tpu.memory_space<smem>>) attributes {dimension_semantics = [#tpu.dimension_semantics<arbitrary>], iteration_bounds = array<i64: 2>, scalar_prefetch = 0 : i64, scratch_operands = 1 : i64, tpu.core_type = #tpu.core_type<tc>, window_params = [{transform_indices = @transform_0, window_bounds = array<i64: 16, 32>}, {transform_indices = @transform_1, window_bounds = array<i64: 16, 1>}, {transform_indices = @transform_2, window_bounds = array<i64: 16, 1>}, {pipeline_mode = #tpu.pipeline_mode<synchronous>, transform_indices = @transform_3, window_bounds = array<i64: 32, 32>}, {pipeline_mode = #tpu.pipeline_mode<synchronous>, transform_indices = @transform_4, window_bounds = array<i64: 1, 32>}, {pipeline_mode = #tpu.pipeline_mode<synchronous>, transform_indices = @transform_5, window_bounds = array<i64: 128, 32>}, {pipeline_mode = #tpu.pipeline_mode<synchronous>, transform_indices = @transform_6, window_bounds = array<i64: 1, 32>}, {pipeline_mode = #tpu.pipeline_mode<synchronous>, transform_indices = @transform_7, window_bounds = array<i64: 128, 32>}, {pipeline_mode = #tpu.pipeline_mode<synchronous>, transform_indices = @transform_8, window_bounds = array<i64: 1, 32>}, {pipeline_mode = #tpu.pipeline_mode<synchronous>, transform_indices = @transform_9, window_bounds = array<i64: 128, 32>}, {pipeline_mode = #tpu.pipeline_mode<synchronous>, transform_indices = @transform_10, window_bounds = array<i64: 1, 32>}, {pipeline_mode = #tpu.pipeline_mode<synchronous>, transform_indices = @transform_11, window_bounds = array<i64: 32, 8>}, {pipeline_mode = #tpu.pipeline_mode<synchronous>, transform_indices = @transform_12, window_bounds = array<i64: 1, 8>}, {transform_indices = @transform_13, window_bounds = array<i64: 16, 8>}, {pipeline_mode = #tpu.pipeline_mode<synchronous>, transform_indices = @transform_14, window_bounds = array<i64: 8, 128>}]} {
    %c0_i32 = arith.constant 0 : i32
    %0 = arith.cmpi eq, %arg0, %c0_i32 : i32
    %1 = arith.extui %0 : i1 to i32
    %c0_i32_0 = arith.constant 0 : i32
    %2 = arith.cmpi ne, %1, %c0_i32_0 : i32
    scf.if %2 {
      %cst_123 = arith.constant 0.000000e+00 : f32
      %c0_124 = arith.constant 0 : index
      %345 = memref.load %arg16[%c0_124] : memref<2xf32, #tpu.memory_space<smem>>
      memref.store %cst_123, %arg16[%c0_124] : memref<2xf32, #tpu.memory_space<smem>>
      %cst_125 = arith.constant 0.000000e+00 : f32
      %c1_126 = arith.constant 1 : index
      %346 = memref.load %arg16[%c1_126] : memref<2xf32, #tpu.memory_space<smem>>
      memref.store %cst_125, %arg16[%c1_126] : memref<2xf32, #tpu.memory_space<smem>>
      %cst_127 = arith.constant 0.000000e+00 : f32
      %347 = vector.broadcast %cst_127 : f32 to vector<8x128xf32>
      %c0_128 = arith.constant 0 : index
      %c0_129 = arith.constant 0 : index
      %348 = vector.load %arg15[%c0_128, %c0_129] : memref<8x128xf32, #tpu.memory_space<vmem>>, vector<8x128xf32>
      tpu.vector_store %arg15[%c0_128, %c0_129], %347 {strides = array<i32>} : memref<8x128xf32, #tpu.memory_space<vmem>>, vector<8x128xf32>,
    } else {
    }
    %c0 = arith.constant 0 : index
    %c0_1 = arith.constant 0 : index
    %3 = vector.load %arg1[%c0, %c0_1] : memref<16x32xf32, #tpu.memory_space<vmem>>, vector<16x32xf32>
    %c0_2 = arith.constant 0 : index
    %c0_3 = arith.constant 0 : index
    %4 = vector.load %arg4[%c0_2, %c0_3] : memref<32x32xbf16, #tpu.memory_space<vmem>>, vector<32x32xbf16>
    %c0_4 = arith.constant 0 : index
    %c0_5 = arith.constant 0 : index
    %5 = vector.load %arg5[%c0_4, %c0_5] : memref<1x32xf32, #tpu.memory_space<vmem>>, vector<1x32xf32>
    %c0_6 = arith.constant 0 : index
    %c0_7 = arith.constant 0 : index
    %6 = vector.load %arg6[%c0_6, %c0_7] : memref<128x32xbf16, #tpu.memory_space<vmem>>, vector<128x32xbf16>
    %c0_8 = arith.constant 0 : index
    %c0_9 = arith.constant 0 : index
    %7 = vector.load %arg7[%c0_8, %c0_9] : memref<1x32xf32, #tpu.memory_space<vmem>>, vector<1x32xf32>
    %c0_10 = arith.constant 0 : index
    %c0_11 = arith.constant 0 : index
    %8 = vector.load %arg8[%c0_10, %c0_11] : memref<128x32xbf16, #tpu.memory_space<vmem>>, vector<128x32xbf16>
    %c0_12 = arith.constant 0 : index
    %c0_13 = arith.constant 0 : index
    %9 = vector.load %arg9[%c0_12, %c0_13] : memref<1x32xf32, #tpu.memory_space<vmem>>, vector<1x32xf32>
    %c0_14 = arith.constant 0 : index
    %c0_15 = arith.constant 0 : index
    %10 = vector.load %arg10[%c0_14, %c0_15] : memref<128x32xbf16, #tpu.memory_space<vmem>>, vector<128x32xbf16>
    %c0_16 = arith.constant 0 : index
    %c0_17 = arith.constant 0 : index
    %11 = vector.load %arg11[%c0_16, %c0_17] : memref<1x32xf32, #tpu.memory_space<vmem>>, vector<1x32xf32>
    %c0_18 = arith.constant 0 : index
    %c0_19 = arith.constant 0 : index
    %12 = vector.load %arg12[%c0_18, %c0_19] : memref<32x8xbf16, #tpu.memory_space<vmem>>, vector<32x8xbf16>
    %c0_20 = arith.constant 0 : index
    %c0_21 = arith.constant 0 : index
    %13 = vector.load %arg13[%c0_20, %c0_21] : memref<1x8xf32, #tpu.memory_space<vmem>>, vector<1x8xf32>
    %14 = tpu.iota {dimensions = array<i32: 0>} : vector<16x1xi32>
    %c16_i32 = arith.constant 16 : i32
    %c0_i32_22 = arith.constant 0 : i32
    %15 = arith.cmpi eq, %c16_i32, %c0_i32_22 : i32
    %c1_i32 = arith.constant 1 : i32
    %16 = arith.select %15, %c1_i32, %c16_i32 : i32
    %17 = vector.broadcast %16 : i32 to vector<16x1xi32>
    %18 = arith.remsi %14, %17 : vector<16x1xi32>
    %c0_i32_23 = arith.constant 0 : i32
    %19 = vector.broadcast %c0_i32_23 : i32 to vector<16x1xi32>
    %20 = arith.cmpi ne, %18, %19 : vector<16x1xi32>
    %c0_i32_24 = arith.constant 0 : i32
    %21 = vector.broadcast %c0_i32_24 : i32 to vector<16x1xi32>
    %22 = arith.cmpi slt, %18, %21 : vector<16x1xi32>
    %c0_i32_25 = arith.constant 0 : i32
    %23 = arith.cmpi slt, %16, %c0_i32_25 : i32
    %24 = vector.broadcast %23 : i1 to vector<16x1xi1>
    %25 = vector.broadcast %24 : vector<16x1xi1> to vector<16x1xi1>
    %26 = arith.xori %22, %25 : vector<16x1xi1>
    %27 = arith.andi %26, %20 : vector<16x1xi1>
    %28 = vector.broadcast %16 : i32 to vector<16x1xi32>
    %29 = arith.addi %18, %28 : vector<16x1xi32>
    %30 = arith.select %27, %29, %18 : vector<16x1xi1>, vector<16x1xi32>
    %c-2_i32 = arith.constant -2 : i32
    %31 = vector.broadcast %c-2_i32 : i32 to vector<16x1xi32>
    %32 = arith.addi %30, %31 : vector<16x1xi32>
    %c0_i32_26 = arith.constant 0 : i32
    %33 = vector.broadcast %c0_i32_26 : i32 to vector<16x1xi32>
    %34 = arith.cmpi sge, %32, %33 : vector<16x1xi32>
    %c-2_i32_27 = arith.constant -2 : i32
    %35 = vector.broadcast %c-2_i32_27 : i32 to vector<16x1xi32>
    %36 = arith.addi %30, %35 : vector<16x1xi32>
    %c16_i32_28 = arith.constant 16 : i32
    %37 = vector.broadcast %c16_i32_28 : i32 to vector<16x1xi32>
    %38 = arith.cmpi slt, %36, %37 : vector<16x1xi32>
    %39 = arith.andi %34, %38 : vector<16x1xi1>
    %40 = arith.extui %39 : vector<16x1xi1> to vector<16x1xi32>
    %41 = arith.sitofp %40 : vector<16x1xi32> to vector<16x1xf32>
    %42 = vector.shape_cast %41 : vector<16x1xf32> to vector<16x1xf32>
    %43 = vector.broadcast %42 : vector<16x1xf32> to vector<16x32xf32>
    %c-1_i32 = arith.constant -1 : i32
    %44 = vector.broadcast %c-1_i32 : i32 to vector<16x1xi32>
    %45 = arith.addi %30, %44 : vector<16x1xi32>
    %c0_i32_29 = arith.constant 0 : i32
    %46 = vector.broadcast %c0_i32_29 : i32 to vector<16x1xi32>
    %47 = arith.cmpi sge, %45, %46 : vector<16x1xi32>
    %c-1_i32_30 = arith.constant -1 : i32
    %48 = vector.broadcast %c-1_i32_30 : i32 to vector<16x1xi32>
    %49 = arith.addi %30, %48 : vector<16x1xi32>
    %c16_i32_31 = arith.constant 16 : i32
    %50 = vector.broadcast %c16_i32_31 : i32 to vector<16x1xi32>
    %51 = arith.cmpi slt, %49, %50 : vector<16x1xi32>
    %52 = arith.andi %47, %51 : vector<16x1xi1>
    %53 = arith.extui %52 : vector<16x1xi1> to vector<16x1xi32>
    %54 = arith.sitofp %53 : vector<16x1xi32> to vector<16x1xf32>
    %55 = vector.shape_cast %54 : vector<16x1xf32> to vector<16x1xf32>
    %56 = vector.broadcast %55 : vector<16x1xf32> to vector<16x32xf32>
    %c1_i32_32 = arith.constant 1 : i32
    %57 = vector.broadcast %c1_i32_32 : i32 to vector<16x1xi32>
    %58 = arith.addi %30, %57 : vector<16x1xi32>
    %c0_i32_33 = arith.constant 0 : i32
    %59 = vector.broadcast %c0_i32_33 : i32 to vector<16x1xi32>
    %60 = arith.cmpi sge, %58, %59 : vector<16x1xi32>
    %c1_i32_34 = arith.constant 1 : i32
    %61 = vector.broadcast %c1_i32_34 : i32 to vector<16x1xi32>
    %62 = arith.addi %30, %61 : vector<16x1xi32>
    %c16_i32_35 = arith.constant 16 : i32
    %63 = vector.broadcast %c16_i32_35 : i32 to vector<16x1xi32>
    %64 = arith.cmpi slt, %62, %63 : vector<16x1xi32>
    %65 = arith.andi %60, %64 : vector<16x1xi1>
    %66 = arith.extui %65 : vector<16x1xi1> to vector<16x1xi32>
    %67 = arith.sitofp %66 : vector<16x1xi32> to vector<16x1xf32>
    %68 = vector.shape_cast %67 : vector<16x1xf32> to vector<16x1xf32>
    %69 = vector.broadcast %68 : vector<16x1xf32> to vector<16x32xf32>
    %c2_i32 = arith.constant 2 : i32
    %70 = vector.broadcast %c2_i32 : i32 to vector<16x1xi32>
    %71 = arith.addi %30, %70 : vector<16x1xi32>
    %c0_i32_36 = arith.constant 0 : i32
    %72 = vector.broadcast %c0_i32_36 : i32 to vector<16x1xi32>
    %73 = arith.cmpi sge, %71, %72 : vector<16x1xi32>
    %c2_i32_37 = arith.constant 2 : i32
    %74 = vector.broadcast %c2_i32_37 : i32 to vector<16x1xi32>
    %75 = arith.addi %30, %74 : vector<16x1xi32>
    %c16_i32_38 = arith.constant 16 : i32
    %76 = vector.broadcast %c16_i32_38 : i32 to vector<16x1xi32>
    %77 = arith.cmpi slt, %75, %76 : vector<16x1xi32>
    %78 = arith.andi %73, %77 : vector<16x1xi1>
    %79 = arith.extui %78 : vector<16x1xi1> to vector<16x1xi32>
    %80 = arith.sitofp %79 : vector<16x1xi32> to vector<16x1xf32>
    %81 = vector.shape_cast %80 : vector<16x1xf32> to vector<16x1xf32>
    %82 = vector.broadcast %81 : vector<16x1xf32> to vector<16x32xf32>
    %cst = arith.constant 0.000000e+00 : f32
    %83 = vector.broadcast %cst : f32 to vector<16x32xf32>
    %84 = arith.truncf %3 : vector<16x32xf32> to vector<16x32xbf16>
    %cst_39 = arith.constant dense<0.000000e+00> : vector<16x32xf32>
    %85 = tpu.matmul %84, %4, %cst_39 {dimension_numbers = #tpu.dot_dimension_numbers<[1], [0], [0], [1], [0, 0, 1, 1], [], []>} : vector<16x32xbf16>, vector<32x32xbf16>, vector<16x32xf32> -> vector<16x32xf32>
    %86 = vector.broadcast %5 : vector<1x32xf32> to vector<16x32xf32>
    %87 = arith.addf %85, %86 : vector<16x32xf32>
    %c1_i32_40 = arith.constant 1 : i32
    %88 = tpu.dynamic_rotate %87 by %c1_i32_40 dim 0 : vector<16x32xf32>, i32 -> vector<16x32xf32>
    %89 = arith.mulf %88, %56 : vector<16x32xf32>
    %c15_i32 = arith.constant 15 : i32
    %90 = tpu.dynamic_rotate %87 by %c15_i32 dim 0 : vector<16x32xf32>, i32 -> vector<16x32xf32>
    %91 = arith.mulf %90, %69 : vector<16x32xf32>
    %92 = tpu.concatenate %89, %87, %91, %83 in 1 : vector<16x32xf32>, vector<16x32xf32>, vector<16x32xf32>, vector<16x32xf32> -> vector<16x128xf32>
    %93 = arith.truncf %92 : vector<16x128xf32> to vector<16x128xbf16>
    %cst_41 = arith.constant dense<0.000000e+00> : vector<16x32xf32>
    %94 = tpu.matmul %93, %6, %cst_41 {dimension_numbers = #tpu.dot_dimension_numbers<[1], [0], [0], [1], [0, 0, 1, 1], [], []>} : vector<16x128xbf16>, vector<128x32xbf16>, vector<16x32xf32> -> vector<16x32xf32>
    %95 = vector.broadcast %7 : vector<1x32xf32> to vector<16x32xf32>
    %96 = arith.addf %94, %95 : vector<16x32xf32>
    %cst_42 = arith.constant 0.000000e+00 : f32
    %97 = vector.broadcast %cst_42 : f32 to vector<16x32xf32>
    %98 = arith.maximumf %96, %97 : vector<16x32xf32>
    %cst_43 = arith.constant dense<0.000000e+00> : vector<16xf32>
    %99 = vector.multi_reduction <add>, %98, %cst_43 [1] : vector<16x32xf32> to vector<16xf32>
    %100 = vector.shape_cast %99 : vector<16xf32> to vector<16x1xf32>
    %cst_44 = arith.constant 3.200000e+01 : f32
    %101 = vector.broadcast %cst_44 : f32 to vector<16x1xf32>
    %102 = arith.divf %100, %101 : vector<16x1xf32>
    %103 = vector.broadcast %102 : vector<16x1xf32> to vector<16x32xf32>
    %104 = arith.subf %98, %103 : vector<16x32xf32>
    %105 = arith.mulf %104, %104 : vector<16x32xf32>
    %cst_45 = arith.constant dense<0.000000e+00> : vector<16xf32>
    %106 = vector.multi_reduction <add>, %105, %cst_45 [1] : vector<16x32xf32> to vector<16xf32>
    %107 = vector.shape_cast %106 : vector<16xf32> to vector<16x1xf32>
    %cst_46 = arith.constant 3.200000e+01 : f32
    %108 = vector.broadcast %cst_46 : f32 to vector<16x1xf32>
    %109 = arith.divf %107, %108 : vector<16x1xf32>
    %110 = vector.broadcast %102 : vector<16x1xf32> to vector<16x32xf32>
    %111 = arith.subf %98, %110 : vector<16x32xf32>
    %cst_47 = arith.constant 9.99999974E-6 : f32
    %112 = vector.broadcast %cst_47 : f32 to vector<16x1xf32>
    %113 = arith.addf %109, %112 : vector<16x1xf32>
    %114 = math.rsqrt %113 : vector<16x1xf32>
    %115 = vector.broadcast %114 : vector<16x1xf32> to vector<16x32xf32>
    %116 = arith.mulf %111, %115 : vector<16x32xf32>
    %c1_i32_48 = arith.constant 1 : i32
    %117 = tpu.dynamic_rotate %116 by %c1_i32_48 dim 0 : vector<16x32xf32>, i32 -> vector<16x32xf32>
    %118 = arith.mulf %117, %56 : vector<16x32xf32>
    %c15_i32_49 = arith.constant 15 : i32
    %119 = tpu.dynamic_rotate %116 by %c15_i32_49 dim 0 : vector<16x32xf32>, i32 -> vector<16x32xf32>
    %120 = arith.mulf %119, %69 : vector<16x32xf32>
    %121 = tpu.concatenate %118, %116, %120, %83 in 1 : vector<16x32xf32>, vector<16x32xf32>, vector<16x32xf32>, vector<16x32xf32> -> vector<16x128xf32>
    %122 = arith.truncf %121 : vector<16x128xf32> to vector<16x128xbf16>
    %cst_50 = arith.constant dense<0.000000e+00> : vector<16x32xf32>
    %123 = tpu.matmul %122, %8, %cst_50 {dimension_numbers = #tpu.dot_dimension_numbers<[1], [0], [0], [1], [0, 0, 1, 1], [], []>} : vector<16x128xbf16>, vector<128x32xbf16>, vector<16x32xf32> -> vector<16x32xf32>
    %124 = vector.broadcast %9 : vector<1x32xf32> to vector<16x32xf32>
    %125 = arith.addf %123, %124 : vector<16x32xf32>
    %c2_i32_51 = arith.constant 2 : i32
    %126 = tpu.dynamic_rotate %125 by %c2_i32_51 dim 0 : vector<16x32xf32>, i32 -> vector<16x32xf32>
    %127 = arith.mulf %126, %43 : vector<16x32xf32>
    %c14_i32 = arith.constant 14 : i32
    %128 = tpu.dynamic_rotate %125 by %c14_i32 dim 0 : vector<16x32xf32>, i32 -> vector<16x32xf32>
    %129 = arith.mulf %128, %82 : vector<16x32xf32>
    %130 = tpu.concatenate %127, %125, %129, %83 in 1 : vector<16x32xf32>, vector<16x32xf32>, vector<16x32xf32>, vector<16x32xf32> -> vector<16x128xf32>
    %131 = arith.truncf %130 : vector<16x128xf32> to vector<16x128xbf16>
    %cst_52 = arith.constant dense<0.000000e+00> : vector<16x32xf32>
    %132 = tpu.matmul %131, %10, %cst_52 {dimension_numbers = #tpu.dot_dimension_numbers<[1], [0], [0], [1], [0, 0, 1, 1], [], []>} : vector<16x128xbf16>, vector<128x32xbf16>, vector<16x32xf32> -> vector<16x32xf32>
    %133 = vector.broadcast %11 : vector<1x32xf32> to vector<16x32xf32>
    %134 = arith.addf %132, %133 : vector<16x32xf32>
    %cst_53 = arith.constant 0.000000e+00 : f32
    %135 = vector.broadcast %cst_53 : f32 to vector<16x32xf32>
    %136 = arith.maximumf %134, %135 : vector<16x32xf32>
    %cst_54 = arith.constant dense<0.000000e+00> : vector<16xf32>
    %137 = vector.multi_reduction <add>, %136, %cst_54 [1] : vector<16x32xf32> to vector<16xf32>
    %138 = vector.shape_cast %137 : vector<16xf32> to vector<16x1xf32>
    %cst_55 = arith.constant 3.200000e+01 : f32
    %139 = vector.broadcast %cst_55 : f32 to vector<16x1xf32>
    %140 = arith.divf %138, %139 : vector<16x1xf32>
    %141 = vector.broadcast %140 : vector<16x1xf32> to vector<16x32xf32>
    %142 = arith.subf %136, %141 : vector<16x32xf32>
    %143 = arith.mulf %142, %142 : vector<16x32xf32>
    %cst_56 = arith.constant dense<0.000000e+00> : vector<16xf32>
    %144 = vector.multi_reduction <add>, %143, %cst_56 [1] : vector<16x32xf32> to vector<16xf32>
    %145 = vector.shape_cast %144 : vector<16xf32> to vector<16x1xf32>
    %cst_57 = arith.constant 3.200000e+01 : f32
    %146 = vector.broadcast %cst_57 : f32 to vector<16x1xf32>
    %147 = arith.divf %145, %146 : vector<16x1xf32>
    %148 = vector.broadcast %140 : vector<16x1xf32> to vector<16x32xf32>
    %149 = arith.subf %136, %148 : vector<16x32xf32>
    %cst_58 = arith.constant 9.99999974E-6 : f32
    %150 = vector.broadcast %cst_58 : f32 to vector<16x1xf32>
    %151 = arith.addf %147, %150 : vector<16x1xf32>
    %152 = math.rsqrt %151 : vector<16x1xf32>
    %153 = vector.broadcast %152 : vector<16x1xf32> to vector<16x32xf32>
    %154 = arith.mulf %149, %153 : vector<16x32xf32>
    %c1_i32_59 = arith.constant 1 : i32
    %155 = tpu.dynamic_rotate %154 by %c1_i32_59 dim 0 : vector<16x32xf32>, i32 -> vector<16x32xf32>
    %156 = arith.mulf %155, %56 : vector<16x32xf32>
    %c15_i32_60 = arith.constant 15 : i32
    %157 = tpu.dynamic_rotate %154 by %c15_i32_60 dim 0 : vector<16x32xf32>, i32 -> vector<16x32xf32>
    %158 = arith.mulf %157, %69 : vector<16x32xf32>
    %159 = tpu.concatenate %156, %154, %158, %83 in 1 : vector<16x32xf32>, vector<16x32xf32>, vector<16x32xf32>, vector<16x32xf32> -> vector<16x128xf32>
    %160 = arith.truncf %159 : vector<16x128xf32> to vector<16x128xbf16>
    %cst_61 = arith.constant dense<0.000000e+00> : vector<16x32xf32>
    %161 = tpu.matmul %160, %6, %cst_61 {dimension_numbers = #tpu.dot_dimension_numbers<[1], [0], [0], [1], [0, 0, 1, 1], [], []>} : vector<16x128xbf16>, vector<128x32xbf16>, vector<16x32xf32> -> vector<16x32xf32>
    %162 = vector.broadcast %7 : vector<1x32xf32> to vector<16x32xf32>
    %163 = arith.addf %161, %162 : vector<16x32xf32>
    %cst_62 = arith.constant 0.000000e+00 : f32
    %164 = vector.broadcast %cst_62 : f32 to vector<16x32xf32>
    %165 = arith.maximumf %163, %164 : vector<16x32xf32>
    %cst_63 = arith.constant dense<0.000000e+00> : vector<16xf32>
    %166 = vector.multi_reduction <add>, %165, %cst_63 [1] : vector<16x32xf32> to vector<16xf32>
    %167 = vector.shape_cast %166 : vector<16xf32> to vector<16x1xf32>
    %cst_64 = arith.constant 3.200000e+01 : f32
    %168 = vector.broadcast %cst_64 : f32 to vector<16x1xf32>
    %169 = arith.divf %167, %168 : vector<16x1xf32>
    %170 = vector.broadcast %169 : vector<16x1xf32> to vector<16x32xf32>
    %171 = arith.subf %165, %170 : vector<16x32xf32>
    %172 = arith.mulf %171, %171 : vector<16x32xf32>
    %cst_65 = arith.constant dense<0.000000e+00> : vector<16xf32>
    %173 = vector.multi_reduction <add>, %172, %cst_65 [1] : vector<16x32xf32> to vector<16xf32>
    %174 = vector.shape_cast %173 : vector<16xf32> to vector<16x1xf32>
    %cst_66 = arith.constant 3.200000e+01 : f32
    %175 = vector.broadcast %cst_66 : f32 to vector<16x1xf32>
    %176 = arith.divf %174, %175 : vector<16x1xf32>
    %177 = vector.broadcast %169 : vector<16x1xf32> to vector<16x32xf32>
    %178 = arith.subf %165, %177 : vector<16x32xf32>
    %cst_67 = arith.constant 9.99999974E-6 : f32
    %179 = vector.broadcast %cst_67 : f32 to vector<16x1xf32>
    %180 = arith.addf %176, %179 : vector<16x1xf32>
    %181 = math.rsqrt %180 : vector<16x1xf32>
    %182 = vector.broadcast %181 : vector<16x1xf32> to vector<16x32xf32>
    %183 = arith.mulf %178, %182 : vector<16x32xf32>
    %c1_i32_68 = arith.constant 1 : i32
    %184 = tpu.dynamic_rotate %183 by %c1_i32_68 dim 0 : vector<16x32xf32>, i32 -> vector<16x32xf32>
    %185 = arith.mulf %184, %56 : vector<16x32xf32>
    %c15_i32_69 = arith.constant 15 : i32
    %186 = tpu.dynamic_rotate %183 by %c15_i32_69 dim 0 : vector<16x32xf32>, i32 -> vector<16x32xf32>
    %187 = arith.mulf %186, %69 : vector<16x32xf32>
    %188 = tpu.concatenate %185, %183, %187, %83 in 1 : vector<16x32xf32>, vector<16x32xf32>, vector<16x32xf32>, vector<16x32xf32> -> vector<16x128xf32>
    %189 = arith.truncf %188 : vector<16x128xf32> to vector<16x128xbf16>
    %cst_70 = arith.constant dense<0.000000e+00> : vector<16x32xf32>
    %190 = tpu.matmul %189, %8, %cst_70 {dimension_numbers = #tpu.dot_dimension_numbers<[1], [0], [0], [1], [0, 0, 1, 1], [], []>} : vector<16x128xbf16>, vector<128x32xbf16>, vector<16x32xf32> -> vector<16x32xf32>
    %191 = vector.broadcast %9 : vector<1x32xf32> to vector<16x32xf32>
    %192 = arith.addf %190, %191 : vector<16x32xf32>
    %c2_i32_71 = arith.constant 2 : i32
    %193 = tpu.dynamic_rotate %192 by %c2_i32_71 dim 0 : vector<16x32xf32>, i32 -> vector<16x32xf32>
    %194 = arith.mulf %193, %43 : vector<16x32xf32>
    %c14_i32_72 = arith.constant 14 : i32
    %195 = tpu.dynamic_rotate %192 by %c14_i32_72 dim 0 : vector<16x32xf32>, i32 -> vector<16x32xf32>
    %196 = arith.mulf %195, %82 : vector<16x32xf32>
    %197 = tpu.concatenate %194, %192, %196, %83 in 1 : vector<16x32xf32>, vector<16x32xf32>, vector<16x32xf32>, vector<16x32xf32> -> vector<16x128xf32>
    %198 = arith.truncf %197 : vector<16x128xf32> to vector<16x128xbf16>
    %cst_73 = arith.constant dense<0.000000e+00> : vector<16x32xf32>
    %199 = tpu.matmul %198, %10, %cst_73 {dimension_numbers = #tpu.dot_dimension_numbers<[1], [0], [0], [1], [0, 0, 1, 1], [], []>} : vector<16x128xbf16>, vector<128x32xbf16>, vector<16x32xf32> -> vector<16x32xf32>
    %200 = vector.broadcast %11 : vector<1x32xf32> to vector<16x32xf32>
    %201 = arith.addf %199, %200 : vector<16x32xf32>
    %c1_i32_74 = arith.constant 1 : i32
    %202 = tpu.dynamic_rotate %201 by %c1_i32_74 dim 0 : vector<16x32xf32>, i32 -> vector<16x32xf32>
    %203 = arith.mulf %202, %56 : vector<16x32xf32>
    %c15_i32_75 = arith.constant 15 : i32
    %204 = tpu.dynamic_rotate %201 by %c15_i32_75 dim 0 : vector<16x32xf32>, i32 -> vector<16x32xf32>
    %205 = arith.mulf %204, %69 : vector<16x32xf32>
    %206 = tpu.concatenate %203, %201, %205, %83 in 1 : vector<16x32xf32>, vector<16x32xf32>, vector<16x32xf32>, vector<16x32xf32> -> vector<16x128xf32>
    %207 = arith.truncf %206 : vector<16x128xf32> to vector<16x128xbf16>
    %cst_76 = arith.constant dense<0.000000e+00> : vector<16x32xf32>
    %208 = tpu.matmul %207, %6, %cst_76 {dimension_numbers = #tpu.dot_dimension_numbers<[1], [0], [0], [1], [0, 0, 1, 1], [], []>} : vector<16x128xbf16>, vector<128x32xbf16>, vector<16x32xf32> -> vector<16x32xf32>
    %209 = vector.broadcast %7 : vector<1x32xf32> to vector<16x32xf32>
    %210 = arith.addf %208, %209 : vector<16x32xf32>
    %cst_77 = arith.constant 0.000000e+00 : f32
    %211 = vector.broadcast %cst_77 : f32 to vector<16x32xf32>
    %212 = arith.maximumf %210, %211 : vector<16x32xf32>
    %cst_78 = arith.constant dense<0.000000e+00> : vector<16xf32>
    %213 = vector.multi_reduction <add>, %212, %cst_78 [1] : vector<16x32xf32> to vector<16xf32>
    %214 = vector.shape_cast %213 : vector<16xf32> to vector<16x1xf32>
    %cst_79 = arith.constant 3.200000e+01 : f32
    %215 = vector.broadcast %cst_79 : f32 to vector<16x1xf32>
    %216 = arith.divf %214, %215 : vector<16x1xf32>
    %217 = vector.broadcast %216 : vector<16x1xf32> to vector<16x32xf32>
    %218 = arith.subf %212, %217 : vector<16x32xf32>
    %219 = arith.mulf %218, %218 : vector<16x32xf32>
    %cst_80 = arith.constant dense<0.000000e+00> : vector<16xf32>
    %220 = vector.multi_reduction <add>, %219, %cst_80 [1] : vector<16x32xf32> to vector<16xf32>
    %221 = vector.shape_cast %220 : vector<16xf32> to vector<16x1xf32>
    %cst_81 = arith.constant 3.200000e+01 : f32
    %222 = vector.broadcast %cst_81 : f32 to vector<16x1xf32>
    %223 = arith.divf %221, %222 : vector<16x1xf32>
    %224 = vector.broadcast %216 : vector<16x1xf32> to vector<16x32xf32>
    %225 = arith.subf %212, %224 : vector<16x32xf32>
    %cst_82 = arith.constant 9.99999974E-6 : f32
    %226 = vector.broadcast %cst_82 : f32 to vector<16x1xf32>
    %227 = arith.addf %223, %226 : vector<16x1xf32>
    %228 = math.rsqrt %227 : vector<16x1xf32>
    %229 = vector.broadcast %228 : vector<16x1xf32> to vector<16x32xf32>
    %230 = arith.mulf %225, %229 : vector<16x32xf32>
    %c1_i32_83 = arith.constant 1 : i32
    %231 = tpu.dynamic_rotate %230 by %c1_i32_83 dim 0 : vector<16x32xf32>, i32 -> vector<16x32xf32>
    %232 = arith.mulf %231, %56 : vector<16x32xf32>
    %c15_i32_84 = arith.constant 15 : i32
    %233 = tpu.dynamic_rotate %230 by %c15_i32_84 dim 0 : vector<16x32xf32>, i32 -> vector<16x32xf32>
    %234 = arith.mulf %233, %69 : vector<16x32xf32>
    %235 = tpu.concatenate %232, %230, %234, %83 in 1 : vector<16x32xf32>, vector<16x32xf32>, vector<16x32xf32>, vector<16x32xf32> -> vector<16x128xf32>
    %236 = arith.truncf %235 : vector<16x128xf32> to vector<16x128xbf16>
    %cst_85 = arith.constant dense<0.000000e+00> : vector<16x32xf32>
    %237 = tpu.matmul %236, %8, %cst_85 {dimension_numbers = #tpu.dot_dimension_numbers<[1], [0], [0], [1], [0, 0, 1, 1], [], []>} : vector<16x128xbf16>, vector<128x32xbf16>, vector<16x32xf32> -> vector<16x32xf32>
    %238 = vector.broadcast %9 : vector<1x32xf32> to vector<16x32xf32>
    %239 = arith.addf %237, %238 : vector<16x32xf32>
    %c2_i32_86 = arith.constant 2 : i32
    %240 = tpu.dynamic_rotate %239 by %c2_i32_86 dim 0 : vector<16x32xf32>, i32 -> vector<16x32xf32>
    %241 = arith.mulf %240, %43 : vector<16x32xf32>
    %c14_i32_87 = arith.constant 14 : i32
    %242 = tpu.dynamic_rotate %239 by %c14_i32_87 dim 0 : vector<16x32xf32>, i32 -> vector<16x32xf32>
    %243 = arith.mulf %242, %82 : vector<16x32xf32>
    %244 = tpu.concatenate %241, %239, %243, %83 in 1 : vector<16x32xf32>, vector<16x32xf32>, vector<16x32xf32>, vector<16x32xf32> -> vector<16x128xf32>
    %245 = arith.truncf %244 : vector<16x128xf32> to vector<16x128xbf16>
    %cst_88 = arith.constant dense<0.000000e+00> : vector<16x32xf32>
    %246 = tpu.matmul %245, %10, %cst_88 {dimension_numbers = #tpu.dot_dimension_numbers<[1], [0], [0], [1], [0, 0, 1, 1], [], []>} : vector<16x128xbf16>, vector<128x32xbf16>, vector<16x32xf32> -> vector<16x32xf32>
    %247 = vector.broadcast %11 : vector<1x32xf32> to vector<16x32xf32>
    %248 = arith.addf %246, %247 : vector<16x32xf32>
    %c1_i32_89 = arith.constant 1 : i32
    %249 = tpu.dynamic_rotate %248 by %c1_i32_89 dim 0 : vector<16x32xf32>, i32 -> vector<16x32xf32>
    %250 = arith.mulf %249, %56 : vector<16x32xf32>
    %c15_i32_90 = arith.constant 15 : i32
    %251 = tpu.dynamic_rotate %248 by %c15_i32_90 dim 0 : vector<16x32xf32>, i32 -> vector<16x32xf32>
    %252 = arith.mulf %251, %69 : vector<16x32xf32>
    %253 = tpu.concatenate %250, %248, %252, %83 in 1 : vector<16x32xf32>, vector<16x32xf32>, vector<16x32xf32>, vector<16x32xf32> -> vector<16x128xf32>
    %254 = arith.truncf %253 : vector<16x128xf32> to vector<16x128xbf16>
    %cst_91 = arith.constant dense<0.000000e+00> : vector<16x32xf32>
    %255 = tpu.matmul %254, %6, %cst_91 {dimension_numbers = #tpu.dot_dimension_numbers<[1], [0], [0], [1], [0, 0, 1, 1], [], []>} : vector<16x128xbf16>, vector<128x32xbf16>, vector<16x32xf32> -> vector<16x32xf32>
    %256 = vector.broadcast %7 : vector<1x32xf32> to vector<16x32xf32>
    %257 = arith.addf %255, %256 : vector<16x32xf32>
    %cst_92 = arith.constant 0.000000e+00 : f32
    %258 = vector.broadcast %cst_92 : f32 to vector<16x32xf32>
    %259 = arith.maximumf %257, %258 : vector<16x32xf32>
    %cst_93 = arith.constant dense<0.000000e+00> : vector<16xf32>
    %260 = vector.multi_reduction <add>, %259, %cst_93 [1] : vector<16x32xf32> to vector<16xf32>
    %261 = vector.shape_cast %260 : vector<16xf32> to vector<16x1xf32>
    %cst_94 = arith.constant 3.200000e+01 : f32
    %262 = vector.broadcast %cst_94 : f32 to vector<16x1xf32>
    %263 = arith.divf %261, %262 : vector<16x1xf32>
    %264 = vector.broadcast %263 : vector<16x1xf32> to vector<16x32xf32>
    %265 = arith.subf %259, %264 : vector<16x32xf32>
    %266 = arith.mulf %265, %265 : vector<16x32xf32>
    %cst_95 = arith.constant dense<0.000000e+00> : vector<16xf32>
    %267 = vector.multi_reduction <add>, %266, %cst_95 [1] : vector<16x32xf32> to vector<16xf32>
    %268 = vector.shape_cast %267 : vector<16xf32> to vector<16x1xf32>
    %cst_96 = arith.constant 3.200000e+01 : f32
    %269 = vector.broadcast %cst_96 : f32 to vector<16x1xf32>
    %270 = arith.divf %268, %269 : vector<16x1xf32>
    %271 = vector.broadcast %263 : vector<16x1xf32> to vector<16x32xf32>
    %272 = arith.subf %259, %271 : vector<16x32xf32>
    %cst_97 = arith.constant 9.99999974E-6 : f32
    %273 = vector.broadcast %cst_97 : f32 to vector<16x1xf32>
    %274 = arith.addf %270, %273 : vector<16x1xf32>
    %275 = math.rsqrt %274 : vector<16x1xf32>
    %276 = vector.broadcast %275 : vector<16x1xf32> to vector<16x32xf32>
    %277 = arith.mulf %272, %276 : vector<16x32xf32>
    %c1_i32_98 = arith.constant 1 : i32
    %278 = tpu.dynamic_rotate %277 by %c1_i32_98 dim 0 : vector<16x32xf32>, i32 -> vector<16x32xf32>
    %279 = arith.mulf %278, %56 : vector<16x32xf32>
    %c15_i32_99 = arith.constant 15 : i32
    %280 = tpu.dynamic_rotate %277 by %c15_i32_99 dim 0 : vector<16x32xf32>, i32 -> vector<16x32xf32>
    %281 = arith.mulf %280, %69 : vector<16x32xf32>
    %282 = tpu.concatenate %279, %277, %281, %83 in 1 : vector<16x32xf32>, vector<16x32xf32>, vector<16x32xf32>, vector<16x32xf32> -> vector<16x128xf32>
    %283 = arith.truncf %282 : vector<16x128xf32> to vector<16x128xbf16>
    %cst_100 = arith.constant dense<0.000000e+00> : vector<16x32xf32>
    %284 = tpu.matmul %283, %8, %cst_100 {dimension_numbers = #tpu.dot_dimension_numbers<[1], [0], [0], [1], [0, 0, 1, 1], [], []>} : vector<16x128xbf16>, vector<128x32xbf16>, vector<16x32xf32> -> vector<16x32xf32>
    %285 = vector.broadcast %9 : vector<1x32xf32> to vector<16x32xf32>
    %286 = arith.addf %284, %285 : vector<16x32xf32>
    %c2_i32_101 = arith.constant 2 : i32
    %287 = tpu.dynamic_rotate %286 by %c2_i32_101 dim 0 : vector<16x32xf32>, i32 -> vector<16x32xf32>
    %288 = arith.mulf %287, %43 : vector<16x32xf32>
    %c14_i32_102 = arith.constant 14 : i32
    %289 = tpu.dynamic_rotate %286 by %c14_i32_102 dim 0 : vector<16x32xf32>, i32 -> vector<16x32xf32>
    %290 = arith.mulf %289, %82 : vector<16x32xf32>
    %291 = tpu.concatenate %288, %286, %290, %83 in 1 : vector<16x32xf32>, vector<16x32xf32>, vector<16x32xf32>, vector<16x32xf32> -> vector<16x128xf32>
    %292 = arith.truncf %291 : vector<16x128xf32> to vector<16x128xbf16>
    %cst_103 = arith.constant dense<0.000000e+00> : vector<16x32xf32>
    %293 = tpu.matmul %292, %10, %cst_103 {dimension_numbers = #tpu.dot_dimension_numbers<[1], [0], [0], [1], [0, 0, 1, 1], [], []>} : vector<16x128xbf16>, vector<128x32xbf16>, vector<16x32xf32> -> vector<16x32xf32>
    %294 = vector.broadcast %11 : vector<1x32xf32> to vector<16x32xf32>
    %295 = arith.addf %293, %294 : vector<16x32xf32>
    %296 = arith.truncf %295 : vector<16x32xf32> to vector<16x32xbf16>
    %cst_104 = arith.constant dense<0.000000e+00> : vector<16x8xf32>
    %297 = tpu.matmul %296, %12, %cst_104 {dimension_numbers = #tpu.dot_dimension_numbers<[1], [0], [0], [1], [0, 0, 1, 1], [], []>} : vector<16x32xbf16>, vector<32x8xbf16>, vector<16x8xf32> -> vector<16x8xf32>
    %298 = vector.broadcast %13 : vector<1x8xf32> to vector<16x8xf32>
    %299 = arith.addf %297, %298 : vector<16x8xf32>
    %c0_105 = arith.constant 0 : index
    %c0_106 = arith.constant 0 : index
    %300 = vector.load %arg14[%c0_105, %c0_106] : memref<16x8xf32, #tpu.memory_space<vmem>>, vector<16x8xf32>
    tpu.vector_store %arg14[%c0_105, %c0_106], %299 {strides = array<i32>} : memref<16x8xf32, #tpu.memory_space<vmem>>, vector<16x8xf32>,
    %cst_107 = arith.constant dense<0xFF800000> : vector<16xf32>
    %301 = vector.multi_reduction <maximumf>, %299, %cst_107 [1] : vector<16x8xf32> to vector<16xf32>
    %302 = vector.shape_cast %301 : vector<16xf32> to vector<16x1xf32>
    %303 = vector.broadcast %302 : vector<16x1xf32> to vector<16x8xf32>
    %304 = arith.subf %299, %303 : vector<16x8xf32>
    %305 = math.exp %304 : vector<16x8xf32>
    %cst_108 = arith.constant dense<0.000000e+00> : vector<16xf32>
    %306 = vector.multi_reduction <add>, %305, %cst_108 [1] : vector<16x8xf32> to vector<16xf32>
    %307 = vector.shape_cast %306 : vector<16xf32> to vector<16x1xf32>
    %308 = math.log %307 : vector<16x1xf32>
    %309 = vector.broadcast %308 : vector<16x1xf32> to vector<16x8xf32>
    %310 = arith.subf %304, %309 : vector<16x8xf32>
    %311 = tpu.iota {dimensions = array<i32: 1>} : vector<16x8xi32>
    %c0_109 = arith.constant 0 : index
    %c0_110 = arith.constant 0 : index
    %312 = vector.load %arg2[%c0_109, %c0_110] : memref<16x1xi32, #tpu.memory_space<vmem>>, vector<16x1xi32>
    %313 = vector.broadcast %312 : vector<16x1xi32> to vector<16x8xi32>
    %314 = arith.cmpi eq, %311, %313 : vector<16x8xi32>
    %315 = arith.extui %314 : vector<16x8xi1> to vector<16x8xi32>
    %316 = arith.sitofp %315 : vector<16x8xi32> to vector<16x8xf32>
    %317 = arith.mulf %310, %316 : vector<16x8xf32>
    %cst_111 = arith.constant dense<0.000000e+00> : vector<16xf32>
    %318 = vector.multi_reduction <add>, %317, %cst_111 [1] : vector<16x8xf32> to vector<16xf32>
    %319 = vector.shape_cast %318 : vector<16xf32> to vector<16x1xf32>
    %cst_112 = arith.constant 0.000000e+00 : f32
    %320 = vector.broadcast %cst_112 : f32 to vector<16x1xf32>
    %321 = arith.subf %320, %319 : vector<16x1xf32>
    %c0_113 = arith.constant 0 : index
    %c0_114 = arith.constant 0 : index
    %322 = vector.load %arg3[%c0_113, %c0_114] : memref<16x1xi32, #tpu.memory_space<vmem>>, vector<16x1xi32>
    %c1_i32_115 = arith.constant 1 : i32
    %323 = vector.broadcast %c1_i32_115 : i32 to vector<16x1xi32>
    %324 = arith.cmpi eq, %322, %323 : vector<16x1xi32>
    %325 = arith.extui %324 : vector<16x1xi1> to vector<16x1xi32>
    %326 = arith.sitofp %325 : vector<16x1xi32> to vector<16x1xf32>
    %c0_116 = arith.constant 0 : index
    %327 = memref.load %arg16[%c0_116] : memref<2xf32, #tpu.memory_space<smem>>
    %328 = arith.mulf %321, %326 : vector<16x1xf32>
    %329 = vector.shape_cast %328 : vector<16x1xf32> to vector<1x16x1xf32>
    %cst_117 = arith.constant dense<0.000000e+00> : vector<1xf32>
    %330 = vector.multi_reduction <add>, %329, %cst_117 [1, 2] : vector<1x16x1xf32> to vector<1xf32>
    %331 = vector.shape_cast %330 : vector<1xf32> to vector<1x1x1xf32>
    %332 = vector.extract %331[0, 0, 0] : f32 from vector<1x1x1xf32>
    %333 = arith.addf %327, %332 : f32
    %c0_118 = arith.constant 0 : index
    %334 = memref.load %arg16[%c0_118] : memref<2xf32, #tpu.memory_space<smem>>
    memref.store %333, %arg16[%c0_118] : memref<2xf32, #tpu.memory_space<smem>>
    %c1 = arith.constant 1 : index
    %335 = memref.load %arg16[%c1] : memref<2xf32, #tpu.memory_space<smem>>
    %336 = vector.shape_cast %326 : vector<16x1xf32> to vector<1x16x1xf32>
    %cst_119 = arith.constant dense<0.000000e+00> : vector<1xf32>
    %337 = vector.multi_reduction <add>, %336, %cst_119 [1, 2] : vector<1x16x1xf32> to vector<1xf32>
    %338 = vector.shape_cast %337 : vector<1xf32> to vector<1x1x1xf32>
    %339 = vector.extract %338[0, 0, 0] : f32 from vector<1x1x1xf32>
    %340 = arith.addf %335, %339 : f32
    %c1_120 = arith.constant 1 : index
    %341 = memref.load %arg16[%c1_120] : memref<2xf32, #tpu.memory_space<smem>>
    memref.store %340, %arg16[%c1_120] : memref<2xf32, #tpu.memory_space<smem>>
    %c1_i32_121 = arith.constant 1 : i32
    %342 = arith.cmpi eq, %arg0, %c1_i32_121 : i32
    %343 = arith.extui %342 : i1 to i32
    %c0_i32_122 = arith.constant 0 : i32
    %344 = arith.cmpi ne, %343, %c0_i32_122 : i32
    scf.if %344 {
      %c0_123 = arith.constant 0 : index
      %345 = memref.load %arg16[%c0_123] : memref<2xf32, #tpu.memory_space<smem>>
      %c1_124 = arith.constant 1 : index
      %346 = memref.load %arg16[%c1_124] : memref<2xf32, #tpu.memory_space<smem>>
      %cst_125 = arith.constant 1.000000e+00 : f32
      %347 = arith.maximumf %346, %cst_125 : f32
      %cst_126 = arith.constant 0.000000e+00 : f32
      %348 = vector.broadcast %cst_126 : f32 to vector<8x128xf32>
      %349 = arith.divf %345, %347 : f32
      %350 = vector.broadcast %349 : f32 to vector<8x128xf32>
      %351 = arith.addf %348, %350 : vector<8x128xf32>
      %c0_127 = arith.constant 0 : index
      %c0_128 = arith.constant 0 : index
      %352 = vector.load %arg15[%c0_127, %c0_128] : memref<8x128xf32, #tpu.memory_space<vmem>>, vector<8x128xf32>
      tpu.vector_store %arg15[%c0_127, %c0_128], %351 {strides = array<i32>} : memref<8x128xf32, #tpu.memory_space<vmem>>, vector<8x128xf32>,
    } else {
    }
    return
  }
  func.func @transform_0(%arg0: i32) -> (i32, i32) {
    %c0_i32 = arith.constant 0 : i32
    %c0_i32_0 = arith.constant 0 : i32
    return %arg0, %c0_i32 : i32, i32
  }
  func.func @transform_1(%arg0: i32) -> (i32, i32) {
    %c0_i32 = arith.constant 0 : i32
    %c0_i32_0 = arith.constant 0 : i32
    return %arg0, %c0_i32 : i32, i32
  }
  func.func @transform_2(%arg0: i32) -> (i32, i32) {
    %c0_i32 = arith.constant 0 : i32
    %c0_i32_0 = arith.constant 0 : i32
    return %arg0, %c0_i32 : i32, i32
  }
  func.func @transform_3(%arg0: i32) -> (i32, i32) {
    %c0_i32 = arith.constant 0 : i32
    %c0_i32_0 = arith.constant 0 : i32
    %c0_i32_1 = arith.constant 0 : i32
    return %c0_i32, %c0_i32_0 : i32, i32
  }
  func.func @transform_4(%arg0: i32) -> (i32, i32) {
    %c0_i32 = arith.constant 0 : i32
    %c0_i32_0 = arith.constant 0 : i32
    %c0_i32_1 = arith.constant 0 : i32
    return %c0_i32, %c0_i32_0 : i32, i32
  }
  func.func @transform_5(%arg0: i32) -> (i32, i32) {
    %c0_i32 = arith.constant 0 : i32
    %c0_i32_0 = arith.constant 0 : i32
    %c0_i32_1 = arith.constant 0 : i32
    return %c0_i32, %c0_i32_0 : i32, i32
  }
  func.func @transform_6(%arg0: i32) -> (i32, i32) {
    %c0_i32 = arith.constant 0 : i32
    %c0_i32_0 = arith.constant 0 : i32
    %c0_i32_1 = arith.constant 0 : i32
    return %c0_i32, %c0_i32_0 : i32, i32
  }
  func.func @transform_7(%arg0: i32) -> (i32, i32) {
    %c0_i32 = arith.constant 0 : i32
    %c0_i32_0 = arith.constant 0 : i32
    %c0_i32_1 = arith.constant 0 : i32
    return %c0_i32, %c0_i32_0 : i32, i32
  }
  func.func @transform_8(%arg0: i32) -> (i32, i32) {
    %c0_i32 = arith.constant 0 : i32
    %c0_i32_0 = arith.constant 0 : i32
    %c0_i32_1 = arith.constant 0 : i32
    return %c0_i32, %c0_i32_0 : i32, i32
  }
  func.func @transform_9(%arg0: i32) -> (i32, i32) {
    %c0_i32 = arith.constant 0 : i32
    %c0_i32_0 = arith.constant 0 : i32
    %c0_i32_1 = arith.constant 0 : i32
    return %c0_i32, %c0_i32_0 : i32, i32
  }
  func.func @transform_10(%arg0: i32) -> (i32, i32) {
    %c0_i32 = arith.constant 0 : i32
    %c0_i32_0 = arith.constant 0 : i32
    %c0_i32_1 = arith.constant 0 : i32
    return %c0_i32, %c0_i32_0 : i32, i32
  }
  func.func @transform_11(%arg0: i32) -> (i32, i32) {
    %c0_i32 = arith.constant 0 : i32
    %c0_i32_0 = arith.constant 0 : i32
    %c0_i32_1 = arith.constant 0 : i32
    return %c0_i32, %c0_i32_0 : i32, i32
  }
  func.func @transform_12(%arg0: i32) -> (i32, i32) {
    %c0_i32 = arith.constant 0 : i32
    %c0_i32_0 = arith.constant 0 : i32
    %c0_i32_1 = arith.constant 0 : i32
    return %c0_i32, %c0_i32_0 : i32, i32
  }
  func.func @transform_13(%arg0: i32) -> (i32, i32) {
    %c0_i32 = arith.constant 0 : i32
    %c0_i32_0 = arith.constant 0 : i32
    return %arg0, %c0_i32 : i32, i32
  }
  func.func @transform_14(%arg0: i32) -> (i32, i32) {
    %c0_i32 = arith.constant 0 : i32
    %c0_i32_0 = arith.constant 0 : i32
    %c0_i32_1 = arith.constant 0 : i32
    return %c0_i32, %c0_i32_0 : i32, i32
  }
}

</mosaic_0001>

<bundles_post_ra>
// kernel: albert_ner_forward.1
= control target key start
LH: loop header
LB: loop body
LE: loop exit
PB: predicated region body
PF: predicated region fallthrough
CT: control target
= control target key end

     0   :  { %s2401_s29 = smov 0   ;;  %s3034_s0 = inlined_call_operand.vmem [shape: f32[32,32], index: 0, kind: input, shape index: {}]   ;;  %s3035_s1 = inlined_call_operand.vmem [shape: s32[32,1], index: 1, kind: input, shape index: {}]   ;;  %s3036_s2 = inlined_call_operand.vmem [shape: s32[32,1], index: 2, kind: input, shape index: {}]   ;;  %s3037_s3 = inlined_call_operand.vmem [shape: bf16[32,32], index: 3, kind: input, shape index: {}]   ;;  %s3038_s4 = inlined_call_operand.vmem [shape: f32[1,32], index: 4, kind: input, shape index: {}]   ;;  %s3039_s5 = inlined_call_operand.vmem [shape: bf16[128,32], index: 5, kind: input, shape index: {}]   ;;  %s3040_s6 = inlined_call_operand.vmem [shape: f32[1,32], index: 6, kind: input, shape index: {}]   ;;  %s3041_s7 = inlined_call_operand.vmem [shape: bf16[128,32], index: 7, kind: input, shape index: {}]   ;;  %s3042_s8 = inlined_call_operand.vmem [shape: f32[1,32], index: 8, kind: input, shape index: {}]   ;;  %s3043_s9 = inlined_call_operand.vmem [shape: bf16[128,32], index: 9, kind: input, shape index: {}]   ;;  %s3044_s10 = inlined_call_operand.vmem [shape: f32[1,32], index: 10, kind: input, shape index: {}]   ;;  %s3045_s11 = inlined_call_operand.vmem [shape: bf16[32,8], index: 11, kind: input, shape index: {}]   ;;  %s3046_s12 = inlined_call_operand.vmem [shape: f32[1,8], index: 12, kind: input, shape index: {}]   ;;  %s3047_s13 = inlined_call_operand.vmem [shape: f32[32,8], index: 13, kind: output, shape index: {0}]   ;;  %s3048_s14 = inlined_call_operand.vmem [shape: f32[8,128], index: 14, kind: output, shape index: {1}]  }
   0x1 LB: > { %s2407_s30 = sadd.s32 4294967295, %s2316_s29   ;;  %p1925_p0 = scmp.ge.s32.totalorder %s2316_s29, 1  ;;  %s2316_s29 = sphi %s2401_s29, %s25_s29  }
   0x2   : > { %p433_p1 = scmp.lt.s32.totalorder %s2316_s29, 3 }
   0x4   : > { %p434_p2 = pnand %p1925_p0, %p433_p1 }
   0x5   : > { %s1926_s15 = sshll.u32 (!%p434_p2), %s2407_s30, 1  ;;  %p1934_p4 = scmp.ne.s32.totalorder (!%p434_p2), %s2407_s30, 0 }
   0x6   : > { %437 = sbr.rel (%p434_p2) target bundleno = 5446 (0x1546), region = 72  ;;  %p490_p3 = scmp.lt.s32.totalorder (!%p434_p2), %s1926_s15, 3 }
   0xb   : > { %s3052_s15 = smov (!%p490_p3, %s1926_s15), 3  ;;  %517 = sbr.rel (%p1934_p4) target bundleno = 18 (0x12), region = 76 }
   0xc   : > { %s1927_s16 = sshll.u32 %s3052_s15, 3  ;;  %s2318_s15 = smov (!%p1934_p4), 0.0  }
   0xd   : > { %s493_s19 = scalar_lea.vmem %s3034_s0, %s1927_s16  ;;  %s2418_s22 = scalar_lea.vmem %s3035_s1, %s1927_s16 }
   0xe   : > { %s2423_s25 = scalar_lea.vmem %s3036_s2, %s1927_s16  ;;  %s2428_s28 = scalar_lea.vmem %s3047_s13, %s1927_s16 }
   0xf   : > { %519 = sst [smem:[#allocation2]] (!%p1934_p4), %s2318_s15 }
  0x10   : > { %v2319_v0 = vmov 0.0   ;;  %521 = sst [smem:[#allocation2 + $0x1]] %s2318_s15 }
  0x11   : > { %522 = vst [vmem:[%s3048_s14] sm:$0xff] %v2319_v0 }
  0x12 PF: > { %v2099_v1 = vld [vmem:[%s3037_s3 + $0x8] sm:$0xff]  ;;  %v2098_v2 = vld [vmem:[%s3037_s3] sm:$0xff]  ;;  %vm677_vm0 = vcmask 261120   ;;  %v586_v6 = vlaneseq  ;;  %v2444_v7 = vld [vmem:[%s3039_s5 + $0x38] sm:$0xff]  ;;  %v2320_v26 = vmov 0.0   ;;  %s2321_s26 = smov 32  }
  0x13   : > { %v523_v3 = vld [vmem:[%s493_s19] sm:$0xff]  ;;  %v524_v4 = vld [vmem:[%s493_s19 + $0x8] sm:$0xff]  ;;  %687 = vmatpush.bf16.msra.mxu0 %v2099_v1  ;;  %785 = vmatpush.bf16.msra.mxu1 %v2444_v7  ;;  %v2450_v8 = vld [vmem:[%s3039_s5 + $0x30] sm:$0xff]  ;;  %s2322_s27 = smov 64   ;;  %vm727_vm5 = vcmask 523264   ;;  %vm730_vm6 = vcmask 785408  }
  0x14   : > { %v661_v5 = vpack.c.bf16 %v524_v4, %v523_v3  ;;  %v2454_v9 = vshrl.u32 %v586_v6, 7  ;;  %v2460_v10 = vld [vmem:[%s3039_s5 + $0x28] sm:$0xff]  ;;  %v2470_v12 = vld [vmem:[%s3039_s5 + $0x20] sm:$0xff]  ;;  %v2481_v16 = vld [vmem:[%s3039_s5 + $0x18] sm:$0xff]  ;;  %v2323_v62 = vmov 32.0   ;;  %p2094_p5 = scmp.ne.s32.totalorder %s2407_s30, 1 }
  0x15   : > { %v2271_v15 = vld [vmem:[%s3038_s4] ss:$0 sm:$0xff]  ;;  %v2507_v34 = vld [vmem:[%s3039_s5 + $0x10] sm:$0xff]  ;;  %v2513_v35 = vld [vmem:[%s3039_s5 + $0x8] sm:$0xff]  ;;  %2276 = vrcp.f32 %v2323_v62  ;;  %s2325_s17 = smov (!%p2094_p5), 1.0  }
  0x16   : > { %v2464_v11 = vadd.s32 8, %v2454_v9  ;;  %vm697_vm2 = vcmp.lt.s32.totalorder %v2454_v9, 1  ;;  %vm704_vm3 = vcmp.lt.s32.totalorder %v2454_v9, 7  ;;  %v2521_v36 = vld [vmem:[%s3039_s5] sm:$0xff]  ;;  %v593_v37 = vand.u32 15, %v2454_v9  ;;  %vm2536_vm7 = vmpackc.low %vm730_vm6, %vm730_vm6 }
  0x17   : > { %688 = vmatpush.bf16.msra.mxu0 %v2098_v2  ;;  %786 = vmatpush.bf16.msra.mxu1 %v2450_v8  ;;  %v2545_v53 = vld [vmem:[%s3040_s6] ss:$0 sm:$0xff] }
  0x18   : > { %v600_v14 = vand.u32 15, %v2464_v11  ;;  %v625_v38 = vadd.s32 4294967295, %v593_v37  ;;  %v2275_v51 = vld [vmem:[%s3046_s12] ss:$0 sm:$0xff] }
  0x1a   : > { %1947 = vmatmul.msk.bf16.vlgmr.msra.gmra.mxu0 %vm677_vm0, %v661_v5  ;;  %v638_v17 = vadd.s32 1, %v600_v14  ;;  %vm627_vm4 = vcmp.ge.s32.totalorder %v625_v38, 0 }
  0x1b   : > { %1135 = vmatpush.bf16.msrb.mxu0 %v2444_v7  ;;  %787 = vmatpush.bf16.msra.mxu1 %v2460_v10  ;;  %v2529_v40 = vsel %vm627_vm4, 1.0, %v2320_v26  ;;  %v2277_v63 = vpop.eup %2276  ;;  %vm961_vm4 = vcmp.lt.s32.totalorder %v2454_v9, 6 }
  0x1c   : > { %vm642_vm1 = vcmp.lt.s32.totalorder %v638_v17, 16  ;;  %v808_v0 = vmul.f32 32.0, %v2277_v63  ;;  %vm812_vm8 = vweird.f32 %v2277_v63 }
  0x1d   : > { %v2491_v27 = vsel %vm642_vm1, 1.0, %v2320_v26  ;;  %vm954_vm1 = vcmp.lt.s32.totalorder %v2454_v9, 2 }
  0x1e   : > { %v809_v1 = vsub.f32 1.0, %v808_v0 }
  0x1f   : > { %1136 = vmatpush.bf16.msrb.mxu0 %v2450_v8  ;;  %788 = vmatpush.bf16.msra.mxu1 %v2470_v12 }
  0x20   : > { %v810_v2 = vmul.f32 %v2277_v63, %v809_v1 }
  0x22   : > { %v811_v3 = vadd.f32 %v2277_v63, %v810_v2 }
  0x23   : > { %1137 = vmatpush.bf16.msrb.mxu0 %v2460_v10  ;;  %789 = vmatpush.bf16.msra.mxu1 %v2481_v16 }
  0x24   : > { %v2551_v4 = vsel %vm812_vm8, %v2277_v63, %v811_v3 }
  0x27   : > { %1138 = vmatpush.bf16.msrb.mxu0 %v2470_v12  ;;  %790 = vmatpush.bf16.msra.mxu1 %v2507_v34 }
  0x2b   : > { %1139 = vmatpush.bf16.msrb.mxu0 %v2481_v16  ;;  %791 = vmatpush.bf16.msra.mxu1 %v2513_v35 }
  0x2f   : > { %1140 = vmatpush.bf16.msrb.mxu0 %v2507_v34  ;;  %792 = vmatpush.bf16.msra.mxu1 %v2521_v36 }
  0x33   : > { %1141 = vmatpush.bf16.msrb.mxu0 %v2513_v35 }
  0x37   : > { %1142 = vmatpush.bf16.msrb.mxu0 %v2521_v36 }
  0x97   : > { %v690_v13 = vpop.f32.mrf.mxu0 }
  0x98   : > { %v691_v18 = vadd.f32 %v2271_v15, %v690_v13 }
  0x9a   : > { %v695_v21 = vrot.slane %v691_v18, 7  ;;  %v702_v22 = vrot.slane %v691_v18, 1 }
  0x9f   : > { %v692_v19 = vpop.f32.mrf.mxu0 }
  0xa0   : > { %v693_v20 = vadd.f32 %v2271_v15, %v692_v19 }
  0xa2   : > { %v696_v23 = vrot.slane %v693_v20, 7  ;;  %v703_v24 = vrot.slane %v693_v20, 1  ;;  %v2148_v25 = vpack.i.bf16 %v693_v20, %v691_v18 }
  0xa4   : > { %v699_v28 = vsel %vm697_vm2, %v696_v23, %v695_v21  ;;  %2149 = vrot.lane.b32.xlu0 %v2148_v25, %s2321_s26  ;;  %v706_v29 = vsel %vm704_vm3, %v703_v24, %v702_v22  ;;  %v698_v30 = vsel %vm697_vm2, %v695_v21, %v696_v23  ;;  %v705_v32 = vsel %vm704_vm3, %v702_v22, %v703_v24 }
  0xa5   : > { %v708_v31 = vmul.f32 %v2491_v27, %v706_v29  ;;  %v700_v43 = vmul.f32 %v2529_v40, %v699_v28 }
  0xa7   : > { %v2153_v33 = vpack.i.bf16 %v708_v31, %v705_v32  ;;  %v2568_v32 = vld [vmem:[%s3041_s7 + $0x30] sm:$0xff] }
  0xac   : > { %2154 = vrot.lane.b32.xlu0 %v2153_v33, %s2322_s27 }
 0x116   : > { %v2150_v39 = vpop.permute.xlu0 %2149 }
 0x117   : > { %v2152_v41 = vunpack.i.h.bf16 %v2150_v39  ;;  %v2151_v42 = vunpack.i.l.bf16 %v2150_v39 }
 0x119   : > { %v725_v47 = vsel %vm677_vm0, %v700_v43, %v2151_v42  ;;  %v726_v48 = vsel %vm677_vm0, %v698_v30, %v2152_v41  ;;  %v2561_v30 = vld [vmem:[%s3041_s7 + $0x38] sm:$0xff]  ;;  %v2576_v42 = vld [vmem:[%s3041_s7 + $0x28] sm:$0xff] }
 0x11a   : > { %938 = vmatpush.bf16.msra.mxu2 %v2561_v30  ;;  %1230 = vmatpush.bf16.msrb.mxu1 %v2561_v30 }
 0x11b   : > { %1423 = vmatpush.bf16.msra.mxu0 %v2561_v30 }
 0x11e   : > { %v2155_v44 = vpop.permute.xlu0 %2154  ;;  %939 = vmatpush.bf16.msra.mxu2 %v2568_v32  ;;  %1231 = vmatpush.bf16.msrb.mxu1 %v2568_v32 }
 0x11f   : > { %v2157_v45 = vunpack.i.h.bf16 %v2155_v44  ;;  %v2156_v46 = vunpack.i.l.bf16 %v2155_v44  ;;  %1424 = vmatpush.bf16.msra.mxu0 %v2568_v32 }
 0x121   : > { %v728_v49 = vsel %vm727_vm5, %v725_v47, %v2156_v46  ;;  %v729_v50 = vsel %vm727_vm5, %v726_v48, %v2157_v45  ;;  %v2584_v45 = vld [vmem:[%s3041_s7 + $0x20] sm:$0xff] }
 0x122   : > { %v1981_v52 = vpack.c.bf16 %v729_v50, %v728_v49  ;;  %940 = vmatpush.bf16.msra.mxu2 %v2576_v42  ;;  %1232 = vmatpush.bf16.msrb.mxu1 %v2576_v42  ;;  %v2592_v50 = vld [vmem:[%s3041_s7 + $0x18] sm:$0xff] }
 0x123   : > { %1425 = vmatpush.bf16.msra.mxu0 %v2576_v42 }
 0x124   : > { %1982 = vmatmul.msk.bf16.vlgmr.msra.gmra.mxu1 %vm2536_vm7, %v1981_v52 }
 0x126   : > { %941 = vmatpush.bf16.msra.mxu2 %v2584_v45  ;;  %1233 = vmatpush.bf16.msrb.mxu1 %v2584_v45 }
 0x127   : > { %1426 = vmatpush.bf16.msra.mxu0 %v2584_v45 }
 0x12a   : > { %942 = vmatpush.bf16.msra.mxu2 %v2592_v50  ;;  %1234 = vmatpush.bf16.msrb.mxu1 %v2592_v50 }
 0x12b   : > { %1427 = vmatpush.bf16.msra.mxu0 %v2592_v50 }
 0x1a1   : > { %v794_v54 = vpop.f32.mrf.mxu1 }
 0x1a2   : > { %v795_v55 = vadd.f32 %v2545_v53, %v794_v54 }
 0x1a4   : > { %v799_v56 = vmax.f32 %v795_v55, 0.0 }
 0x1a6   : > { %v801_v57 = vsel %vm677_vm0, %v799_v56, 0.0 }
 0x1a7   : > { %802 = vadd.xlane.f32.xlu1 %v801_v57 }
 0x1a9   : > { %v796_v58 = vpop.f32.mrf.mxu1 }
 0x1aa   : > { %v797_v59 = vadd.f32 %v2545_v53, %v796_v58 }
 0x1ac   : > { %v800_v60 = vmax.f32 %v797_v59, 0.0 }
 0x1ae   : > { %v804_v61 = vsel %vm677_vm0, %v800_v60, 0.0 }
 0x1af   : > { %805 = vadd.xlane.f32.xlu1 %v804_v61 }
 0x21a   : > { %v803_v5 = vpop.xlane.xlu1 %802 }
 0x21b   : > { %v814_v13 = vmul.f32 %v2551_v4, %v803_v5 }
 0x21d   : > { %v816_v15 = vsub.f32 %v799_v56, %v814_v13  ;;  %v2600_v56 = vld [vmem:[%s3041_s7 + $0x10] sm:$0xff] }
 0x21e   : > { %943 = vmatpush.bf16.msra.mxu2 %v2600_v56  ;;  %1235 = vmatpush.bf16.msrb.mxu1 %v2600_v56 }
 0x21f   : > { %v818_v17 = vmul.f32 %v816_v15, %v816_v15  ;;  %1428 = vmatpush.bf16.msra.mxu0 %v2600_v56 }
 0x221   : > { %v820_v18 = vsel %vm677_vm0, %v818_v17, 0.0 }
 0x222   : > { %821 = vadd.xlane.f32.xlu2 %v820_v18  ;;  %v806_v19 = vpop.xlane.xlu1 %805  ;;  %v2621_v18 = vld [vmem:[%s3041_s7 + $0x8] sm:$0xff] }
 0x223   : > { %v815_v20 = vmul.f32 %v2551_v4, %v806_v19  ;;  %944 = vmatpush.bf16.msra.mxu2 %v2621_v18  ;;  %1236 = vmatpush.bf16.msrb.mxu1 %v2621_v18  ;;  %v2629_v19 = vld [vmem:[%s3041_s7] sm:$0xff] }
 0x224   : > { %1429 = vmatpush.bf16.msra.mxu0 %v2621_v18 }
 0x225   : > { %v817_v21 = vsub.f32 %v800_v60, %v815_v20 }
 0x227   : > { %v819_v22 = vmul.f32 %v817_v21, %v817_v21  ;;  %945 = vmatpush.bf16.msra.mxu2 %v2629_v19  ;;  %1237 = vmatpush.bf16.msrb.mxu1 %v2629_v19 }
 0x228   : > { %1430 = vmatpush.bf16.msra.mxu0 %v2629_v19 }
 0x229   : > { %v823_v23 = vsel %vm677_vm0, %v819_v22, 0.0 }
 0x22a   : > { %824 = vadd.xlane.f32.xlu2 %v823_v23 }
 0x295   : > { %v822_v24 = vpop.xlane.xlu2 %821 }
 0x296   : > { %v826_v25 = vmul.f32 %v822_v24, %v2551_v4 }
 0x298   : > { %v828_v28 = vadd.f32 1e-05, %v826_v25 }
 0x29a   : > { %2278 = vrsqrt.f32 %v828_v28  ;;  %vm836_vm10 = vweird.f32 %v828_v28 }
 0x29d   : > { %v825_v29 = vpop.xlane.xlu2 %824 }
 0x29e   : > { %v827_v31 = vmul.f32 %v825_v29, %v2551_v4 }
 0x2a0   : > { %v2279_v33 = vpop.eup %2278  ;;  %v829_v38 = vadd.f32 1e-05, %v827_v31 }
 0x2a1   : > { %v831_v39 = vmul.f32 %v2279_v33, %v828_v28  ;;  %vm837_vm9 = vweird.f32 %v2279_v33 }
 0x2a2   : > { %2280 = vrsqrt.f32 %v829_v38  ;;  %vm838_vm11 = vmor %vm836_vm10, %vm837_vm9  ;;  %vm846_vm13 = vweird.f32 %v829_v38 }
 0x2a3   : > { %v832_v41 = vmul.f32 %v2279_v33, %v831_v39 }
 0x2a5   : > { %v833_v43 = vmul.f32 0.5, %v832_v41 }
 0x2a7   : > { %v834_v44 = vsub.f32 1.5, %v833_v43  ;;  %v2644_v43 = vld [vmem:[%s3042_s8] ss:$0 sm:$0xff] }
 0x2a8   : > { %v2281_v46 = vpop.eup %2280 }
 0x2a9   : > { %v841_v47 = vmul.f32 %v2281_v46, %v829_v38  ;;  %v835_v48 = vmul.f32 %v2279_v33, %v834_v44  ;;  %vm847_vm12 = vweird.f32 %v2281_v46  ;;  %v650_v44 = vadd.s32 2, %v600_v14 }
 0x2aa   : > { %vm848_vm14 = vmor %vm846_vm13, %vm847_vm12 }
 0x2ab   : > { %v842_v49 = vmul.f32 %v2281_v46, %v841_v47  ;;  %v839_v54 = vsel %vm838_vm11, %v2279_v33, %v835_v48  ;;  %vm654_vm15 = vcmp.lt.s32.totalorder %v650_v44, 16 }
 0x2ac   : > { %v850_v58 = vmul.f32 %v839_v54, %v816_v15 }
 0x2ad   : > { %v843_v52 = vmul.f32 0.5, %v842_v49 }
 0x2ae   : > { %v858_v61 = vrot.slane %v850_v58, 1  ;;  %v852_v0 = vrot.slane %v850_v58, 7 }
 0x2af   : > { %v844_v55 = vsub.f32 1.5, %v843_v52  ;;  %v2652_v52 = vsel %vm654_vm15, 1.0, %v2320_v26 }
 0x2b1   : > { %v845_v57 = vmul.f32 %v2281_v46, %v844_v55 }
 0x2b3   : > { %v849_v59 = vsel %vm848_vm14, %v2281_v46, %v845_v57 }
 0x2b4   : > { %v851_v60 = vmul.f32 %v849_v59, %v817_v21 }
 0x2b6   : > { %v2158_v62 = vpack.i.bf16 %v851_v60, %v850_v58  ;;  %v859_v63 = vrot.slane %v851_v60, 1  ;;  %v853_v1 = vrot.slane %v851_v60, 7 }
 0x2b8   : > { %2159 = vrot.lane.b32.xlu0 %v2158_v62, %s2321_s26  ;;  %v861_v2 = vsel %vm704_vm3, %v859_v63, %v858_v61  ;;  %v854_v3 = vsel %vm697_vm2, %v852_v0, %v853_v1  ;;  %v855_v5 = vsel %vm697_vm2, %v853_v1, %v852_v0  ;;  %v860_v15 = vsel %vm704_vm3, %v858_v61, %v859_v63  ;;  %v2671_v63 = vld [vmem:[%s3043_s9 + $0x38] sm:$0xff]  ;;  %v2677_v0 = vld [vmem:[%s3043_s9 + $0x30] sm:$0xff]  ;;  %v2685_v1 = vld [vmem:[%s3043_s9 + $0x28] sm:$0xff] }
 0x2b9   : > { %v863_v13 = vmul.f32 %v2491_v27, %v861_v2  ;;  %v856_v23 = vmul.f32 %v2529_v40, %v855_v5  ;;  %1040 = vmatpush.bf16.msra.mxu3 %v2671_v63  ;;  %1279 = vmatpush.bf16.msrb.mxu2 %v2671_v63  ;;  %v2693_v2 = vld [vmem:[%s3043_s9 + $0x20] sm:$0xff]  ;;  %v2709_v5 = vld [vmem:[%s3043_s9 + $0x10] sm:$0xff] }
 0x2ba   : > { %1472 = vmatpush.bf16.msra.mxu1 %v2671_v63 }
 0x2bb   : > { %v2163_v17 = vpack.i.bf16 %v863_v13, %v860_v15  ;;  %v2717_v13 = vld [vmem:[%s3043_s9 + $0x8] sm:$0xff]  ;;  %v2727_v15 = vld [vmem:[%s3043_s9] sm:$0xff] }
 0x2bd   : > { %2164 = vrot.lane.b32.xlu1 %v2163_v17, %s2322_s27  ;;  %1041 = vmatpush.bf16.msra.mxu3 %v2677_v0  ;;  %v613_v17 = vadd.s32 4294967294, %v593_v37 }
 0x2be   : > { %1280 = vmatpush.bf16.msrb.mxu2 %v2677_v0  ;;  %1473 = vmatpush.bf16.msra.mxu1 %v2677_v0 }
 0x2bf   : > { %vm615_vm6 = vcmp.ge.s32.totalorder %v613_v17, 0 }
 0x2c1   : > { %1042 = vmatpush.bf16.msra.mxu3 %v2685_v1 }
 0x2c2   : > { %1281 = vmatpush.bf16.msrb.mxu2 %v2685_v1  ;;  %1474 = vmatpush.bf16.msra.mxu1 %v2685_v1 }
 0x2c5   : > { %1043 = vmatpush.bf16.msra.mxu3 %v2693_v2 }
 0x2c6   : > { %1282 = vmatpush.bf16.msrb.mxu2 %v2693_v2  ;;  %1475 = vmatpush.bf16.msra.mxu1 %v2693_v2 }
 0x32a   : > { %v2160_v20 = vpop.permute.xlu0 %2159 }
 0x32b   : > { %v2162_v21 = vunpack.i.h.bf16 %v2160_v20  ;;  %v2161_v22 = vunpack.i.l.bf16 %v2160_v20 }
 0x32d   : > { %v880_v29 = vsel %vm677_vm0, %v856_v23, %v2161_v22  ;;  %v881_v31 = vsel %vm677_vm0, %v854_v3, %v2162_v21  ;;  %v2701_v3 = vld [vmem:[%s3043_s9 + $0x18] sm:$0xff] }
 0x32e   : > { %1044 = vmatpush.bf16.msra.mxu3 %v2701_v3  ;;  %1283 = vmatpush.bf16.msrb.mxu2 %v2701_v3 }
 0x32f   : > { %v2165_v24 = vpop.permute.xlu1 %2164  ;;  %1476 = vmatpush.bf16.msra.mxu1 %v2701_v3 }
 0x330   : > { %v2167_v25 = vunpack.i.h.bf16 %v2165_v24  ;;  %v2166_v28 = vunpack.i.l.bf16 %v2165_v24 }
 0x332   : > { %v882_v33 = vsel %vm727_vm5, %v880_v29, %v2166_v28  ;;  %v883_v38 = vsel %vm727_vm5, %v881_v31, %v2167_v25  ;;  %1045 = vmatpush.bf16.msra.mxu3 %v2709_v5  ;;  %1284 = vmatpush.bf16.msrb.mxu2 %v2709_v5 }
 0x333   : > { %v2016_v39 = vpack.c.bf16 %v883_v38, %v882_v33  ;;  %1477 = vmatpush.bf16.msra.mxu1 %v2709_v5 }
 0x335   : > { %2017 = vmatmul.msk.bf16.vlgmr.msra.gmra.mxu2 %vm2536_vm7, %v2016_v39 }
 0x336   : > { %1046 = vmatpush.bf16.msra.mxu3 %v2717_v13  ;;  %1285 = vmatpush.bf16.msrb.mxu2 %v2717_v13 }
 0x337   : > { %1478 = vmatpush.bf16.msra.mxu1 %v2717_v13 }
 0x33a   : > { %1047 = vmatpush.bf16.msra.mxu3 %v2727_v15  ;;  %1286 = vmatpush.bf16.msrb.mxu2 %v2727_v15 }
 0x33b   : > { %1479 = vmatpush.bf16.msra.mxu1 %v2727_v15 }
 0x33e   : > { %1328 = vmatpush.bf16.msrb.mxu3 %v2444_v7  ;;  %1521 = vmatpush.bf16.msra.mxu2 %v2444_v7 }
 0x342   : > { %1329 = vmatpush.bf16.msrb.mxu3 %v2450_v8  ;;  %1522 = vmatpush.bf16.msra.mxu2 %v2450_v8  ;;  %v2748_v8 = vsel %vm615_vm6, 1.0, %v2320_v26 }
 0x346   : > { %1330 = vmatpush.bf16.msrb.mxu3 %v2460_v10  ;;  %1523 = vmatpush.bf16.msra.mxu2 %v2460_v10 }
 0x34a   : > { %1331 = vmatpush.bf16.msrb.mxu3 %v2470_v12  ;;  %1524 = vmatpush.bf16.msra.mxu2 %v2470_v12 }
 0x34e   : > { %1332 = vmatpush.bf16.msrb.mxu3 %v2481_v16  ;;  %1525 = vmatpush.bf16.msra.mxu2 %v2481_v16 }
 0x352   : > { %1333 = vmatpush.bf16.msrb.mxu3 %v2507_v34  ;;  %1526 = vmatpush.bf16.msra.mxu2 %v2507_v34 }
 0x356   : > { %1334 = vmatpush.bf16.msrb.mxu3 %v2513_v35  ;;  %1527 = vmatpush.bf16.msra.mxu2 %v2513_v35 }
 0x35a   : > { %1335 = vmatpush.bf16.msrb.mxu3 %v2521_v36  ;;  %1528 = vmatpush.bf16.msra.mxu2 %v2521_v36  ;;  %v2772_v36 = vld [vmem:[%s3044_s10] ss:$0 sm:$0xff] }
 0x3b8   : > { %v947_v41 = vpop.f32.mrf.mxu2 }
 0x3b9   : > { %v948_v46 = vadd.f32 %v2644_v43, %v947_v41 }
 0x3bb   : > { %v952_v49 = vrot.slane %v948_v46, 6  ;;  %v959_v54 = vrot.slane %v948_v46, 2 }
 0x3c0   : > { %v949_v47 = vpop.f32.mrf.mxu2 }
 0x3c1   : > { %v950_v48 = vadd.f32 %v2644_v43, %v949_v47 }
 0x3c3   : > { %v953_v55 = vrot.slane %v950_v48, 6  ;;  %v960_v57 = vrot.slane %v950_v48, 2  ;;  %v2168_v58 = vpack.i.bf16 %v950_v48, %v948_v46 }
 0x3c5   : > { %v956_v11 = vsel %vm954_vm1, %v953_v55, %v952_v49  ;;  %2169 = vrot.lane.b32.xlu2 %v2168_v58, %s2321_s26  ;;  %v963_v14 = vsel %vm961_vm4, %v960_v57, %v959_v54  ;;  %v2662_v59 = vsel %vm954_vm1, %v952_v49, %v953_v55  ;;  %v962_v61 = vsel %vm961_vm4, %v959_v54, %v960_v57 }
 0x3c6   : > { %v965_v60 = vmul.f32 %v2652_v52, %v963_v14  ;;  %v957_v16 = vmul.f32 %v2748_v8, %v956_v11 }
 0x3c8   : > { %v2173_v62 = vpack.i.bf16 %v965_v60, %v962_v61 }
 0x3ca   : > { %2174 = vrot.lane.b32.xlu0 %v2173_v62, %s2322_s27 }
 0x41f   : > { %v2170_v7 = vpop.permute.xlu2 %2169 }
 0x420   : > { %v2172_v10 = vunpack.i.h.bf16 %v2170_v7  ;;  %v2171_v12 = vunpack.i.l.bf16 %v2170_v7 }
 0x422   : > { %v982_v34 = vsel %vm677_vm0, %v957_v16, %v2171_v12  ;;  %v983_v22 = vsel %vm677_vm0, %v2662_v59, %v2172_v10 }
 0x43c   : > { %v2175_v20 = vpop.permute.xlu0 %2174 }
 0x43d   : > { %v2177_v37 = vunpack.i.h.bf16 %v2175_v20  ;;  %v2176_v21 = vunpack.i.l.bf16 %v2175_v20 }
 0x43f   : > { %v984_v23 = vsel %vm727_vm5, %v982_v34, %v2176_v21  ;;  %v985_v35 = vsel %vm727_vm5, %v983_v22, %v2177_v37 }
 0x440   : > { %v2051_v24 = vpack.c.bf16 %v985_v35, %v984_v23 }
 0x442   : > { %2052 = vmatmul.msk.bf16.vlgmr.msra.gmra.mxu3 %vm2536_vm7, %v2051_v24 }
 0x443   : > { %1616 = vmatpush.bf16.msra.mxu3 %v2561_v30 }
 0x447   : > { %1617 = vmatpush.bf16.msra.mxu3 %v2568_v32 }
 0x44b   : > { %1618 = vmatpush.bf16.msra.mxu3 %v2576_v42 }
 0x44f   : > { %1619 = vmatpush.bf16.msra.mxu3 %v2584_v45 }
 0x453   : > { %1620 = vmatpush.bf16.msra.mxu3 %v2592_v50 }
 0x457   : > { %1621 = vmatpush.bf16.msra.mxu3 %v2600_v56 }
 0x45b   : > { %1622 = vmatpush.bf16.msra.mxu3 %v2621_v18 }
 0x45f   : > { %1623 = vmatpush.bf16.msra.mxu3 %v2629_v19 }
 0x4c5   : > { %v1049_v30 = vpop.f32.mrf.mxu3 }
 0x4c6   : > { %v1050_v32 = vadd.f32 %v2772_v36, %v1049_v30 }
 0x4c8   : > { %v1054_v25 = vmax.f32 %v1050_v32, 0.0 }
 0x4ca   : > { %v1056_v42 = vsel %vm677_vm0, %v1054_v25, 0.0 }
 0x4cb   : > { %1057 = vadd.xlane.f32.xlu0 %v1056_v42 }
 0x4cd   : > { %v1051_v45 = vpop.f32.mrf.mxu3 }
 0x4ce   : > { %v1052_v50 = vadd.f32 %v2772_v36, %v1051_v45 }
 0x4d0   : > { %v1055_v56 = vmax.f32 %v1052_v50, 0.0 }
 0x4d2   : > { %v1059_v18 = vsel %vm677_vm0, %v1055_v56, 0.0 }
 0x4d3   : > { %1060 = vadd.xlane.f32.xlu2 %v1059_v18 }
 0x53e   : > { %v1058_v19 = vpop.xlane.xlu0 %1057 }
 0x53f   : > { %v1062_v28 = vmul.f32 %v1058_v19, %v2551_v4 }
 0x541   : > { %v1064_v29 = vsub.f32 %v1054_v25, %v1062_v28 }
 0x543   : > { %v1066_v31 = vmul.f32 %v1064_v29, %v1064_v29 }
 0x545   : > { %v1068_v33 = vsel %vm677_vm0, %v1066_v31, 0.0 }
 0x546   : > { %v1061_v38 = vpop.xlane.xlu2 %1060  ;;  %1069 = vadd.xlane.f32.xlu1 %v1068_v33 }
 0x547   : > { %v1063_v39 = vmul.f32 %v1061_v38, %v2551_v4 }
 0x549   : > { %v1065_v41 = vsub.f32 %v1055_v56, %v1063_v39 }
 0x54b   : > { %v1067_v44 = vmul.f32 %v1065_v41, %v1065_v41 }
 0x54d   : > { %v1071_v46 = vsel %vm677_vm0, %v1067_v44, 0.0 }
 0x54e   : > { %1072 = vadd.xlane.f32.xlu0 %v1071_v46 }
 0x5b9   : > { %v1070_v47 = vpop.xlane.xlu1 %1069 }
 0x5ba   : > { %v1074_v48 = vmul.f32 %v1070_v47, %v2551_v4 }
 0x5bc   : > { %v1076_v49 = vadd.f32 1e-05, %v1074_v48 }
 0x5be   : > { %2282 = vrsqrt.f32 %v1076_v49  ;;  %vm1084_vm9 = vweird.f32 %v1076_v49 }
 0x5c1   : > { %v1073_v54 = vpop.xlane.xlu0 %1072 }
 0x5c2   : > { %v1075_v55 = vmul.f32 %v1073_v54, %v2551_v4 }
 0x5c4   : > { %v2283_v57 = vpop.eup %2282  ;;  %v1077_v58 = vadd.f32 1e-05, %v1075_v55 }
 0x5c5   : > { %v1079_v11 = vmul.f32 %v2283_v57, %v1076_v49  ;;  %vm1085_vm8 = vweird.f32 %v2283_v57 }
 0x5c6   : > { %2284 = vrsqrt.f32 %v1077_v58  ;;  %vm1086_vm10 = vmor %vm1084_vm9, %vm1085_vm8  ;;  %vm1094_vm12 = vweird.f32 %v1077_v58 }
 0x5c7   : > { %v1080_v14 = vmul.f32 %v2283_v57, %v1079_v11 }
 0x5c9   : > { %v1081_v59 = vmul.f32 0.5, %v1080_v14 }
 0x5cb   : > { %v1082_v60 = vsub.f32 1.5, %v1081_v59 }
 0x5cc   : > { %v2285_v61 = vpop.eup %2284 }
 0x5cd   : > { %v1089_v62 = vmul.f32 %v2285_v61, %v1077_v58  ;;  %v1083_v17 = vmul.f32 %v2283_v57, %v1082_v60  ;;  %vm1095_vm11 = vweird.f32 %v2285_v61 }
 0x5ce   : > { %vm1096_vm13 = vmor %vm1094_vm12, %vm1095_vm11 }
 0x5cf   : > { %v1090_v7 = vmul.f32 %v2285_v61, %v1089_v62  ;;  %v1087_v12 = vsel %vm1086_vm10, %v2283_v57, %v1083_v17 }
 0x5d0   : > { %v1098_v37 = vmul.f32 %v1087_v12, %v1064_v29 }
 0x5d1   : > { %v1091_v10 = vmul.f32 0.5, %v1090_v7 }
 0x5d2   : > { %v1106_v22 = vrot.slane %v1098_v37, 1  ;;  %v1100_v24 = vrot.slane %v1098_v37, 7 }
 0x5d3   : > { %v1092_v16 = vsub.f32 1.5, %v1091_v10 }
 0x5d5   : > { %v1093_v20 = vmul.f32 %v2285_v61, %v1092_v16 }
 0x5d7   : > { %v1097_v21 = vsel %vm1096_vm13, %v2285_v61, %v1093_v20 }
 0x5d8   : > { %v1099_v34 = vmul.f32 %v1097_v21, %v1065_v41 }
 0x5da   : > { %v2178_v23 = vpack.i.bf16 %v1099_v34, %v1098_v37  ;;  %v1107_v35 = vrot.slane %v1099_v34, 1  ;;  %v1101_v30 = vrot.slane %v1099_v34, 7 }
 0x5dc   : > { %2179 = vrot.lane.b32.xlu2 %v2178_v23, %s2321_s26  ;;  %v1109_v32 = vsel %vm704_vm3, %v1107_v35, %v1106_v22  ;;  %v1102_v25 = vsel %vm697_vm2, %v1100_v24, %v1101_v30  ;;  %v1103_v42 = vsel %vm697_vm2, %v1101_v30, %v1100_v24  ;;  %v1108_v50 = vsel %vm704_vm3, %v1106_v22, %v1107_v35 }
 0x5dd   : > { %v1111_v45 = vmul.f32 %v2491_v27, %v1109_v32  ;;  %v1104_v29 = vmul.f32 %v2529_v40, %v1103_v42 }
 0x5df   : > { %v2183_v56 = vpack.i.bf16 %v1111_v45, %v1108_v50 }
 0x5e1   : > { %2184 = vrot.lane.b32.xlu0 %v2183_v56, %s2322_s27 }
 0x636   : > { %v2180_v18 = vpop.permute.xlu2 %2179 }
 0x637   : > { %v2182_v19 = vunpack.i.h.bf16 %v2180_v18  ;;  %v2181_v28 = vunpack.i.l.bf16 %v2180_v18 }
 0x639   : > { %v1128_v39 = vsel %vm677_vm0, %v1104_v29, %v2181_v28  ;;  %v1129_v41 = vsel %vm677_vm0, %v1102_v25, %v2182_v19 }
 0x653   : > { %v2185_v31 = vpop.permute.xlu0 %2184 }
 0x654   : > { %v2187_v33 = vunpack.i.h.bf16 %v2185_v31  ;;  %v2186_v38 = vunpack.i.l.bf16 %v2185_v31 }
 0x656   : > { %v1130_v44 = vsel %vm727_vm5, %v1128_v39, %v2186_v38  ;;  %v1131_v46 = vsel %vm727_vm5, %v1129_v41, %v2187_v33 }
 0x657   : > { %v2054_v47 = vpack.c.bf16 %v1131_v46, %v1130_v44 }
 0x659   : > { %2055 = vmatmul.msk.bf16.vlgmr.msrb.gmra.mxu0 %vm2536_vm7, %v2054_v47 }
 0x65a   : > { %1665 = vmatpush.bf16.msrb.mxu0 %v2671_v63 }
 0x65e   : > { %1666 = vmatpush.bf16.msrb.mxu0 %v2677_v0 }
 0x662   : > { %1667 = vmatpush.bf16.msrb.mxu0 %v2685_v1 }
 0x666   : > { %1668 = vmatpush.bf16.msrb.mxu0 %v2693_v2 }
 0x66a   : > { %1669 = vmatpush.bf16.msrb.mxu0 %v2701_v3 }
 0x66e   : > { %1670 = vmatpush.bf16.msrb.mxu0 %v2709_v5 }
 0x672   : > { %1671 = vmatpush.bf16.msrb.mxu0 %v2717_v13 }
 0x676   : > { %1672 = vmatpush.bf16.msrb.mxu0 %v2727_v15 }
 0x6d6   : > { %v1144_v48 = vpop.f32.mrf.mxu0 }
 0x6d7   : > { %v1145_v49 = vadd.f32 %v2545_v53, %v1144_v48 }
 0x6d9   : > { %v1149_v54 = vmax.f32 %v1145_v49, 0.0 }
 0x6db   : > { %v1151_v63 = vsel %vm677_vm0, %v1149_v54, 0.0 }
 0x6dc   : > { %1152 = vadd.xlane.f32.xlu1 %v1151_v63 }
 0x6de   : > { %v1146_v0 = vpop.f32.mrf.mxu0 }
 0x6df   : > { %v1147_v1 = vadd.f32 %v2545_v53, %v1146_v0 }
 0x6e1   : > { %v1150_v55 = vmax.f32 %v1147_v1, 0.0 }
 0x6e3   : > { %v1154_v2 = vsel %vm677_vm0, %v1150_v55, 0.0 }
 0x6e4   : > { %1155 = vadd.xlane.f32.xlu1 %v1154_v2 }
 0x74f   : > { %v1153_v3 = vpop.xlane.xlu1 %1152 }
 0x750   : > { %v1157_v5 = vmul.f32 %v1153_v3, %v2551_v4 }
 0x752   : > { %v1159_v13 = vsub.f32 %v1149_v54, %v1157_v5 }
 0x754   : > { %v1161_v57 = vmul.f32 %v1159_v13, %v1159_v13 }
 0x756   : > { %v1163_v15 = vsel %vm677_vm0, %v1161_v57, 0.0 }
 0x757   : > { %1164 = vadd.xlane.f32.xlu1 %v1163_v15  ;;  %v1156_v58 = vpop.xlane.xlu1 %1155 }
 0x758   : > { %v1158_v11 = vmul.f32 %v1156_v58, %v2551_v4 }
 0x75a   : > { %v1160_v14 = vsub.f32 %v1150_v55, %v1158_v11 }
 0x75c   : > { %v1162_v59 = vmul.f32 %v1160_v14, %v1160_v14 }
 0x75e   : > { %v1166_v60 = vsel %vm677_vm0, %v1162_v59, 0.0 }
 0x75f   : > { %1167 = vadd.xlane.f32.xlu0 %v1166_v60 }
 0x7ca   : > { %v1165_v61 = vpop.xlane.xlu1 %1164 }
 0x7cb   : > { %v1169_v62 = vmul.f32 %v1165_v61, %v2551_v4 }
 0x7cd   : > { %v1171_v17 = vadd.f32 1e-05, %v1169_v62 }
 0x7cf   : > { %2286 = vrsqrt.f32 %v1171_v17  ;;  %vm1179_vm15 = vweird.f32 %v1171_v17 }
 0x7d2   : > { %v1168_v7 = vpop.xlane.xlu0 %1167 }
 0x7d3   : > { %v1170_v10 = vmul.f32 %v1168_v7, %v2551_v4 }
 0x7d5   : > { %v2287_v12 = vpop.eup %2286  ;;  %v1172_v16 = vadd.f32 1e-05, %v1170_v10 }
 0x7d6   : > { %v1174_v20 = vmul.f32 %v2287_v12, %v1171_v17  ;;  %vm1180_vm14 = vweird.f32 %v2287_v12 }
 0x7d7   : > { %2288 = vrsqrt.f32 %v1172_v16  ;;  %vm1181_vm6 = vmor %vm1179_vm15, %vm1180_vm14  ;;  %vm1189_vm9 = vweird.f32 %v1172_v16 }
 0x7d8   : > { %v1175_v37 = vmul.f32 %v2287_v12, %v1174_v20 }
 0x7da   : > { %v1176_v21 = vmul.f32 0.5, %v1175_v37 }
 0x7dc   : > { %v1177_v34 = vsub.f32 1.5, %v1176_v21 }
 0x7dd   : > { %v2289_v22 = vpop.eup %2288 }
 0x7de   : > { %v1184_v23 = vmul.f32 %v2289_v22, %v1172_v16  ;;  %v1178_v35 = vmul.f32 %v2287_v12, %v1177_v34  ;;  %vm1190_vm8 = vweird.f32 %v2289_v22 }
 0x7df   : > { %vm1191_vm10 = vmor %vm1189_vm9, %vm1190_vm8 }
 0x7e0   : > { %v1185_v24 = vmul.f32 %v2289_v22, %v1184_v23  ;;  %v1182_v32 = vsel %vm1181_vm6, %v2287_v12, %v1178_v35 }
 0x7e1   : > { %v1193_v45 = vmul.f32 %v1182_v32, %v1159_v13 }
 0x7e2   : > { %v1186_v30 = vmul.f32 0.5, %v1185_v24 }
 0x7e3   : > { %v1201_v18 = vrot.slane %v1193_v45, 1  ;;  %v1195_v31 = vrot.slane %v1193_v45, 7 }
 0x7e4   : > { %v1187_v25 = vsub.f32 1.5, %v1186_v30 }
 0x7e6   : > { %v1188_v42 = vmul.f32 %v2289_v22, %v1187_v25 }
 0x7e8   : > { %v1192_v50 = vsel %vm1191_vm10, %v2289_v22, %v1188_v42 }
 0x7e9   : > { %v1194_v56 = vmul.f32 %v1192_v50, %v1160_v14 }
 0x7eb   : > { %v2188_v19 = vpack.i.bf16 %v1194_v56, %v1193_v45  ;;  %v1202_v28 = vrot.slane %v1194_v56, 1  ;;  %v1196_v29 = vrot.slane %v1194_v56, 7 }
 0x7ed   : > { %2189 = vrot.lane.b32.xlu2 %v2188_v19, %s2321_s26  ;;  %v1204_v33 = vsel %vm704_vm3, %v1202_v28, %v1201_v18  ;;  %v1197_v38 = vsel %vm697_vm2, %v1195_v31, %v1196_v29  ;;  %v1198_v39 = vsel %vm697_vm2, %v1196_v29, %v1195_v31  ;;  %v1203_v44 = vsel %vm704_vm3, %v1201_v18, %v1202_v28 }
 0x7ee   : > { %v1206_v41 = vmul.f32 %v2491_v27, %v1204_v33  ;;  %v1199_v54 = vmul.f32 %v2529_v40, %v1198_v39 }
 0x7f0   : > { %v2193_v46 = vpack.i.bf16 %v1206_v41, %v1203_v44 }
 0x7f2   : > { %2194 = vrot.lane.b32.xlu1 %v2193_v46, %s2322_s27 }
 0x847   : > { %v2190_v47 = vpop.permute.xlu2 %2189 }
 0x848   : > { %v2192_v48 = vunpack.i.h.bf16 %v2190_v47  ;;  %v2191_v49 = vunpack.i.l.bf16 %v2190_v47 }
 0x84a   : > { %v1223_v55 = vsel %vm677_vm0, %v1199_v54, %v2191_v49  ;;  %v1224_v2 = vsel %vm677_vm0, %v1197_v38, %v2192_v48 }
 0x864   : > { %v2195_v63 = vpop.permute.xlu1 %2194 }
 0x865   : > { %v2197_v0 = vunpack.i.h.bf16 %v2195_v63  ;;  %v2196_v1 = vunpack.i.l.bf16 %v2195_v63 }
 0x867   : > { %v1225_v3 = vsel %vm727_vm5, %v1223_v55, %v2196_v1  ;;  %v1226_v5 = vsel %vm727_vm5, %v1224_v2, %v2197_v0 }
 0x868   : > { %v2057_v13 = vpack.c.bf16 %v1226_v5, %v1225_v3 }
 0x86a   : > { %2058 = vmatmul.msk.bf16.vlgmr.msrb.gmra.mxu1 %vm2536_vm7, %v2057_v13 }
 0x8e7   : > { %v1239_v57 = vpop.f32.mrf.mxu1 }
 0x8e8   : > { %v1240_v15 = vadd.f32 %v2644_v43, %v1239_v57 }
 0x8ea   : > { %v1244_v14 = vrot.slane %v1240_v15, 6  ;;  %v1250_v59 = vrot.slane %v1240_v15, 2 }
 0x8ef   : > { %v1241_v58 = vpop.f32.mrf.mxu1 }
 0x8f0   : > { %v1242_v11 = vadd.f32 %v2644_v43, %v1241_v58 }
 0x8f2   : > { %v1245_v60 = vrot.slane %v1242_v11, 6  ;;  %v1251_v61 = vrot.slane %v1242_v11, 2  ;;  %v2198_v62 = vpack.i.bf16 %v1242_v11, %v1240_v15 }
 0x8f4   : > { %v1247_v17 = vsel %vm954_vm1, %v1245_v60, %v1244_v14  ;;  %2199 = vrot.lane.b32.xlu2 %v2198_v62, %s2321_s26  ;;  %v1253_v7 = vsel %vm961_vm4, %v1251_v61, %v1250_v59  ;;  %v1246_v10 = vsel %vm954_vm1, %v1244_v14, %v1245_v60  ;;  %v1252_v16 = vsel %vm961_vm4, %v1250_v59, %v1251_v61 }
 0x8f5   : > { %v1255_v12 = vmul.f32 %v2652_v52, %v1253_v7  ;;  %v1248_v22 = vmul.f32 %v2748_v8, %v1247_v17 }
 0x8f7   : > { %v2203_v20 = vpack.i.bf16 %v1255_v12, %v1252_v16 }
 0x8fc   : > { %2204 = vrot.lane.b32.xlu2 %v2203_v20, %s2322_s27 }
 0x94e   : > { %v2200_v37 = vpop.permute.xlu2 %2199 }
 0x94f   : > { %v2202_v21 = vunpack.i.h.bf16 %v2200_v37  ;;  %v2201_v34 = vunpack.i.l.bf16 %v2200_v37 }
 0x951   : > { %v1272_v30 = vsel %vm677_vm0, %v1248_v22, %v2201_v34  ;;  %v1273_v32 = vsel %vm677_vm0, %v1246_v10, %v2202_v21 }
 0x956   : > { %v2205_v23 = vpop.permute.xlu2 %2204 }
 0x957   : > { %v2207_v35 = vunpack.i.h.bf16 %v2205_v23  ;;  %v2206_v24 = vunpack.i.l.bf16 %v2205_v23 }
 0x959   : > { %v1274_v25 = vsel %vm727_vm5, %v1272_v30, %v2206_v24  ;;  %v1275_v42 = vsel %vm727_vm5, %v1273_v32, %v2207_v35 }
 0x95a   : > { %v2060_v45 = vpack.c.bf16 %v1275_v42, %v1274_v25 }
 0x95c   : > { %2061 = vmatmul.msk.bf16.vlgmr.msrb.gmra.mxu2 %vm2536_vm7, %v2060_v45 }
 0x9df   : > { %v1288_v50 = vpop.f32.mrf.mxu2 }
 0x9e0   : > { %v1289_v56 = vadd.f32 %v2772_v36, %v1288_v50 }
 0x9e2   : > { %v1293_v28 = vrot.slane %v1289_v56, 7  ;;  %v1299_v29 = vrot.slane %v1289_v56, 1 }
 0x9e7   : > { %v1290_v18 = vpop.f32.mrf.mxu2 }
 0x9e8   : > { %v1291_v19 = vadd.f32 %v2772_v36, %v1290_v18 }
 0x9ea   : > { %v1294_v31 = vrot.slane %v1291_v19, 7  ;;  %v1300_v33 = vrot.slane %v1291_v19, 1  ;;  %v2208_v38 = vpack.i.bf16 %v1291_v19, %v1289_v56 }
 0x9ec   : > { %v1296_v39 = vsel %vm697_vm2, %v1294_v31, %v1293_v28  ;;  %2209 = vrot.lane.b32.xlu2 %v2208_v38, %s2321_s26  ;;  %v1302_v41 = vsel %vm704_vm3, %v1300_v33, %v1299_v29  ;;  %v1295_v44 = vsel %vm697_vm2, %v1293_v28, %v1294_v31  ;;  %v1301_v47 = vsel %vm704_vm3, %v1299_v29, %v1300_v33 }
 0x9ed   : > { %v1304_v46 = vmul.f32 %v2491_v27, %v1302_v41  ;;  %v1297_v0 = vmul.f32 %v2529_v40, %v1296_v39 }
 0x9ef   : > { %v2213_v48 = vpack.i.bf16 %v1304_v46, %v1301_v47 }
 0x9f1   : > { %2214 = vrot.lane.b32.xlu1 %v2213_v48, %s2322_s27 }
 0xa46   : > { %v2210_v49 = vpop.permute.xlu2 %2209 }
 0xa47   : > { %v2212_v54 = vunpack.i.h.bf16 %v2210_v49  ;;  %v2211_v63 = vunpack.i.l.bf16 %v2210_v49 }
 0xa49   : > { %v1321_v3 = vsel %vm677_vm0, %v1297_v0, %v2211_v63  ;;  %v1322_v5 = vsel %vm677_vm0, %v1295_v44, %v2212_v54 }
 0xa63   : > { %v2215_v1 = vpop.permute.xlu1 %2214 }
 0xa64   : > { %v2217_v55 = vunpack.i.h.bf16 %v2215_v1  ;;  %v2216_v2 = vunpack.i.l.bf16 %v2215_v1 }
 0xa66   : > { %v1323_v13 = vsel %vm727_vm5, %v1321_v3, %v2216_v2  ;;  %v1324_v57 = vsel %vm727_vm5, %v1322_v5, %v2217_v55 }
 0xa67   : > { %v2063_v15 = vpack.c.bf16 %v1324_v57, %v1323_v13 }
 0xa69   : > { %2064 = vmatmul.msk.bf16.vlgmr.msrb.gmra.mxu3 %vm2536_vm7, %v2063_v15 }
 0xaec   : > { %v1337_v58 = vpop.f32.mrf.mxu3 }
 0xaed   : > { %v1338_v11 = vadd.f32 %v2545_v53, %v1337_v58 }
 0xaef   : > { %v1342_v14 = vmax.f32 %v1338_v11, 0.0 }
 0xaf1   : > { %v1344_v59 = vsel %vm677_vm0, %v1342_v14, 0.0 }
 0xaf2   : > { %1345 = vadd.xlane.f32.xlu2 %v1344_v59 }
 0xaf4   : > { %v1339_v60 = vpop.f32.mrf.mxu3 }
 0xaf5   : > { %v1340_v61 = vadd.f32 %v2545_v53, %v1339_v60 }
 0xaf7   : > { %v1343_v62 = vmax.f32 %v1340_v61, 0.0 }
 0xaf9   : > { %v1347_v17 = vsel %vm677_vm0, %v1343_v62, 0.0 }
 0xafa   : > { %1348 = vadd.xlane.f32.xlu1 %v1347_v17 }
 0xb65   : > { %v1346_v7 = vpop.xlane.xlu2 %1345 }
 0xb66   : > { %v1350_v10 = vmul.f32 %v1346_v7, %v2551_v4 }
 0xb68   : > { %v1352_v12 = vsub.f32 %v1342_v14, %v1350_v10 }
 0xb6a   : > { %v1354_v16 = vmul.f32 %v1352_v12, %v1352_v12 }
 0xb6c   : > { %v1356_v20 = vsel %vm677_vm0, %v1354_v16, 0.0 }
 0xb6d   : > { %v1349_v37 = vpop.xlane.xlu1 %1348  ;;  %1357 = vadd.xlane.f32.xlu0 %v1356_v20 }
 0xb6e   : > { %v1351_v21 = vmul.f32 %v1349_v37, %v2551_v4 }
 0xb70   : > { %v1353_v34 = vsub.f32 %v1343_v62, %v1351_v21 }
 0xb72   : > { %v1355_v22 = vmul.f32 %v1353_v34, %v1353_v34 }
 0xb74   : > { %v1359_v23 = vsel %vm677_vm0, %v1355_v22, 0.0 }
 0xb75   : > { %1360 = vadd.xlane.f32.xlu0 %v1359_v23 }
 0xbe0   : > { %v1358_v53 = vpop.xlane.xlu0 %1357 }
 0xbe1   : > { %v1362_v35 = vmul.f32 %v1358_v53, %v2551_v4 }
 0xbe3   : > { %v1364_v24 = vadd.f32 1e-05, %v1362_v35 }
 0xbe5   : > { %2290 = vrsqrt.f32 %v1364_v24  ;;  %vm1372_vm12 = vweird.f32 %v1364_v24 }
 0xbe8   : > { %v1361_v30 = vpop.xlane.xlu0 %1360 }
 0xbe9   : > { %v1363_v32 = vmul.f32 %v1361_v30, %v2551_v4 }
 0xbeb   : > { %v2291_v25 = vpop.eup %2290  ;;  %v1365_v42 = vadd.f32 1e-05, %v1363_v32 }
 0xbec   : > { %v1367_v45 = vmul.f32 %v2291_v25, %v1364_v24  ;;  %vm1373_vm11 = vweird.f32 %v2291_v25 }
 0xbed   : > { %2292 = vrsqrt.f32 %v1365_v42  ;;  %vm1374_vm13 = vmor %vm1372_vm12, %vm1373_vm11  ;;  %vm1382_vm15 = vweird.f32 %v1365_v42 }
 0xbee   : > { %v1368_v50 = vmul.f32 %v2291_v25, %v1367_v45 }
 0xbf0   : > { %v1369_v56 = vmul.f32 0.5, %v1368_v50 }
 0xbf2   : > { %v1370_v18 = vsub.f32 1.5, %v1369_v56 }
 0xbf3   : > { %v2293_v19 = vpop.eup %2292 }
 0xbf4   : > { %v1377_v28 = vmul.f32 %v2293_v19, %v1365_v42  ;;  %v1371_v29 = vmul.f32 %v2291_v25, %v1370_v18  ;;  %vm1383_vm14 = vweird.f32 %v2293_v19 }
 0xbf5   : > { %vm1384_vm6 = vmor %vm1382_vm15, %vm1383_vm14 }
 0xbf6   : > { %v1378_v31 = vmul.f32 %v2293_v19, %v1377_v28  ;;  %v1375_v38 = vsel %vm1374_vm13, %v2291_v25, %v1371_v29 }
 0xbf7   : > { %v1386_v44 = vmul.f32 %v1375_v38, %v1352_v12 }
 0xbf8   : > { %v1379_v33 = vmul.f32 0.5, %v1378_v31 }
 0xbf9   : > { %v1394_v48 = vrot.slane %v1386_v44, 1  ;;  %v1388_v63 = vrot.slane %v1386_v44, 7 }
 0xbfa   : > { %v1380_v39 = vsub.f32 1.5, %v1379_v33 }
 0xbfc   : > { %v1381_v41 = vmul.f32 %v2293_v19, %v1380_v39 }
 0xbfe   : > { %v1385_v46 = vsel %vm1384_vm6, %v2293_v19, %v1381_v41 }
 0xbff   : > { %v1387_v47 = vmul.f32 %v1385_v46, %v1353_v34 }
 0xc01   : > { %v2218_v49 = vpack.i.bf16 %v1387_v47, %v1386_v44  ;;  %v1395_v54 = vrot.slane %v1387_v47, 1  ;;  %v1389_v0 = vrot.slane %v1387_v47, 7 }
 0xc03   : > { %2219 = vrot.lane.b32.xlu0 %v2218_v49, %s2321_s26  ;;  %v1397_v1 = vsel %vm704_vm3, %v1395_v54, %v1394_v48  ;;  %v1390_v55 = vsel %vm697_vm2, %v1388_v63, %v1389_v0  ;;  %v1391_v2 = vsel %vm697_vm2, %v1389_v0, %v1388_v63  ;;  %v1396_v5 = vsel %vm704_vm3, %v1394_v48, %v1395_v54 }
 0xc04   : > { %v1399_v3 = vmul.f32 %v2491_v27, %v1397_v1  ;;  %v1392_v14 = vmul.f32 %v2529_v40, %v1391_v2 }
 0xc06   : > { %v2223_v13 = vpack.i.bf16 %v1399_v3, %v1396_v5 }
 0xc08   : > { %2224 = vrot.lane.b32.xlu2 %v2223_v13, %s2322_s27 }
 0xc62   : > { %v2225_v57 = vpop.permute.xlu2 %2224 }
 0xc63   : > { %v2227_v59 = vunpack.i.h.bf16 %v2225_v57  ;;  %v2226_v60 = vunpack.i.l.bf16 %v2225_v57 }
 0xc75   : > { %v2220_v15 = vpop.permute.xlu0 %2219 }
 0xc76   : > { %v2222_v58 = vunpack.i.h.bf16 %v2220_v15  ;;  %v2221_v11 = vunpack.i.l.bf16 %v2220_v15 }
 0xc78   : > { %v1416_v61 = vsel %vm677_vm0, %v1392_v14, %v2221_v11  ;;  %v1417_v62 = vsel %vm677_vm0, %v1390_v55, %v2222_v58 }
 0xc79   : > { %v1418_v17 = vsel %vm727_vm5, %v1416_v61, %v2226_v60  ;;  %v1419_v7 = vsel %vm727_vm5, %v1417_v62, %v2227_v59 }
 0xc7a   : > { %v2066_v10 = vpack.c.bf16 %v1419_v7, %v1418_v17 }
 0xc7c   : > { %2067 = vmatmul.msk.bf16.vlgmr.msra.gmra.mxu0 %vm2536_vm7, %v2066_v10 }
 0xcf9   : > { %v1432_v12 = vpop.f32.mrf.mxu0 }
 0xcfa   : > { %v1433_v16 = vadd.f32 %v2644_v43, %v1432_v12 }
 0xcfc   : > { %v1437_v21 = vrot.slane %v1433_v16, 6  ;;  %v1443_v34 = vrot.slane %v1433_v16, 2 }
 0xd01   : > { %v1434_v20 = vpop.f32.mrf.mxu0 }
 0xd02   : > { %v1435_v37 = vadd.f32 %v2644_v43, %v1434_v20 }
 0xd04   : > { %v1438_v22 = vrot.slane %v1435_v37, 6  ;;  %v1444_v23 = vrot.slane %v1435_v37, 2  ;;  %v2228_v53 = vpack.i.bf16 %v1435_v37, %v1433_v16  ;;  %v2306_v16 = vld [vmem:[%s3040_s6] ss:$0 sm:$0xff] }
 0xd06   : > { %v1440_v35 = vsel %vm954_vm1, %v1438_v22, %v1437_v21  ;;  %2229 = vrot.lane.b32.xlu0 %v2228_v53, %s2321_s26  ;;  %v1446_v24 = vsel %vm961_vm4, %v1444_v23, %v1443_v34  ;;  %v1439_v30 = vsel %vm954_vm1, %v1437_v21, %v1438_v22  ;;  %v1445_v43 = vsel %vm961_vm4, %v1443_v34, %v1444_v23 }
 0xd07   : > { %v1448_v32 = vmul.f32 %v2652_v52, %v1446_v24  ;;  %v1441_v56 = vmul.f32 %v2748_v8, %v1440_v35 }
 0xd09   : > { %v2233_v25 = vpack.i.bf16 %v1448_v32, %v1445_v43 }
 0xd0b   : > { %2234 = vrot.lane.b32.xlu1 %v2233_v25, %s2322_s27 }
 0xd78   : > { %v2230_v42 = vpop.permute.xlu0 %2229 }
 0xd79   : > { %v2232_v45 = vunpack.i.h.bf16 %v2230_v42  ;;  %v2231_v50 = vunpack.i.l.bf16 %v2230_v42 }
 0xd7b   : > { %v1465_v29 = vsel %vm677_vm0, %v1441_v56, %v2231_v50  ;;  %v1466_v31 = vsel %vm677_vm0, %v1439_v30, %v2232_v45 }
 0xd7d   : > { %v2235_v18 = vpop.permute.xlu1 %2234 }
 0xd7e   : > { %v2237_v19 = vunpack.i.h.bf16 %v2235_v18  ;;  %v2236_v28 = vunpack.i.l.bf16 %v2235_v18 }
 0xd80   : > { %v1467_v33 = vsel %vm727_vm5, %v1465_v29, %v2236_v28  ;;  %v1468_v38 = vsel %vm727_vm5, %v1466_v31, %v2237_v19 }
 0xd81   : > { %v2069_v39 = vpack.c.bf16 %v1468_v38, %v1467_v33 }
 0xd83   : > { %2070 = vmatmul.msk.bf16.vlgmr.msra.gmra.mxu1 %vm2536_vm7, %v2069_v39 }
 0xe00   : > { %v1481_v41 = vpop.f32.mrf.mxu1 }
 0xe01   : > { %v1482_v44 = vadd.f32 %v2772_v36, %v1481_v41 }
 0xe03   : > { %v1486_v48 = vrot.slane %v1482_v44, 7  ;;  %v1492_v49 = vrot.slane %v1482_v44, 1 }
 0xe08   : > { %v1483_v46 = vpop.f32.mrf.mxu1 }
 0xe09   : > { %v1484_v47 = vadd.f32 %v2772_v36, %v1483_v46 }
 0xe0b   : > { %v1487_v54 = vrot.slane %v1484_v47, 7  ;;  %v1493_v63 = vrot.slane %v1484_v47, 1  ;;  %v2238_v0 = vpack.i.bf16 %v1484_v47, %v1482_v44 }
 0xe0d   : > { %v1489_v1 = vsel %vm697_vm2, %v1487_v54, %v1486_v48  ;;  %2239 = vrot.lane.b32.xlu0 %v2238_v0, %s2321_s26  ;;  %v1495_v55 = vsel %vm704_vm3, %v1493_v63, %v1492_v49  ;;  %v1488_v2 = vsel %vm697_vm2, %v1486_v48, %v1487_v54  ;;  %v1494_v5 = vsel %vm704_vm3, %v1492_v49, %v1493_v63 }
 0xe0e   : > { %v1497_v3 = vmul.f32 %v2491_v27, %v1495_v55  ;;  %v1490_v11 = vmul.f32 %v2529_v40, %v1489_v1 }
 0xe10   : > { %v2243_v13 = vpack.i.bf16 %v1497_v3, %v1494_v5 }
 0xe15   : > { %2244 = vrot.lane.b32.xlu0 %v2243_v13, %s2322_s27 }
 0xe7f   : > { %v2240_v57 = vpop.permute.xlu0 %2239 }
 0xe80   : > { %v2242_v15 = vunpack.i.h.bf16 %v2240_v57  ;;  %v2241_v58 = vunpack.i.l.bf16 %v2240_v57 }
 0xe82   : > { %v1514_v61 = vsel %vm677_vm0, %v1490_v11, %v2241_v58  ;;  %v1515_v62 = vsel %vm677_vm0, %v1488_v2, %v2242_v15 }
 0xe87   : > { %v2245_v14 = vpop.permute.xlu0 %2244 }
 0xe88   : > { %v2247_v59 = vunpack.i.h.bf16 %v2245_v14  ;;  %v2246_v60 = vunpack.i.l.bf16 %v2245_v14 }
 0xe8a   : > { %v1516_v17 = vsel %vm727_vm5, %v1514_v61, %v2246_v60  ;;  %v1517_v7 = vsel %vm727_vm5, %v1515_v62, %v2247_v59 }
 0xe8b   : > { %v2072_v10 = vpack.c.bf16 %v1517_v7, %v1516_v17 }
 0xe8d   : > { %2073 = vmatmul.msk.bf16.vlgmr.msra.gmra.mxu2 %vm2536_vm7, %v2072_v10 }
 0xf10   : > { %v1530_v12 = vpop.f32.mrf.mxu2 }
 0xf11   : > { %v1531_v20 = vadd.f32 %v2306_v16, %v1530_v12 }
 0xf13   : > { %v1535_v37 = vmax.f32 %v1531_v20, 0.0 }
 0xf15   : > { %v1537_v21 = vsel %vm677_vm0, %v1535_v37, 0.0 }
 0xf16   : > { %1538 = vadd.xlane.f32.xlu2 %v1537_v21 }
 0xf18   : > { %v1532_v34 = vpop.f32.mrf.mxu2 }
 0xf19   : > { %v1533_v22 = vadd.f32 %v2306_v16, %v1532_v34 }
 0xf1b   : > { %v1536_v23 = vmax.f32 %v1533_v22, 0.0 }
 0xf1d   : > { %v1540_v53 = vsel %vm677_vm0, %v1536_v23, 0.0 }
 0xf1e   : > { %1541 = vadd.xlane.f32.xlu0 %v1540_v53 }
 0xf89   : > { %v1539_v35 = vpop.xlane.xlu2 %1538 }
 0xf8a   : > { %v1543_v24 = vmul.f32 %v1539_v35, %v2551_v4 }
 0xf8c   : > { %v1545_v30 = vsub.f32 %v1535_v37, %v1543_v24 }
 0xf8e   : > { %v1547_v32 = vmul.f32 %v1545_v30, %v1545_v30 }
 0xf90   : > { %v1549_v43 = vsel %vm677_vm0, %v1547_v32, 0.0 }
 0xf91   : > { %v1542_v25 = vpop.xlane.xlu0 %1541  ;;  %1550 = vadd.xlane.f32.xlu1 %v1549_v43 }
 0xf92   : > { %v1544_v42 = vmul.f32 %v1542_v25, %v2551_v4 }
 0xf94   : > { %v1546_v45 = vsub.f32 %v1536_v23, %v1544_v42 }
 0xf96   : > { %v1548_v50 = vmul.f32 %v1546_v45, %v1546_v45 }
 0xf98   : > { %v1552_v56 = vsel %vm677_vm0, %v1548_v50, 0.0 }
 0xf99   : > { %1553 = vadd.xlane.f32.xlu2 %v1552_v56 }
0x1004   : > { %v1551_v18 = vpop.xlane.xlu1 %1550 }
0x1005   : > { %v1555_v19 = vmul.f32 %v1551_v18, %v2551_v4 }
0x1007   : > { %v1557_v28 = vadd.f32 1e-05, %v1555_v19 }
0x1009   : > { %2294 = vrsqrt.f32 %v1557_v28  ;;  %vm1565_vm9 = vweird.f32 %v1557_v28 }
0x100c   : > { %v1554_v29 = vpop.xlane.xlu2 %1553 }
0x100d   : > { %v1556_v31 = vmul.f32 %v1554_v29, %v2551_v4 }
0x100f   : > { %v2295_v33 = vpop.eup %2294  ;;  %v1558_v38 = vadd.f32 1e-05, %v1556_v31  ;;  %v2125_v31 = vld [vmem:[%s3045_s11 + $0x8] sm:$0xff] }
0x1010   : > { %v1560_v39 = vmul.f32 %v2295_v33, %v1557_v28  ;;  %vm1566_vm8 = vweird.f32 %v2295_v33  ;;  %1704 = vmatpush.bf16.msrb.mxu1 %v2125_v31 }
0x1011   : > { %2296 = vrsqrt.f32 %v1558_v38  ;;  %vm1567_vm10 = vmor %vm1565_vm9, %vm1566_vm8  ;;  %vm1575_vm12 = vweird.f32 %v1558_v38 }
0x1012   : > { %v1561_v41 = vmul.f32 %v2295_v33, %v1560_v39 }
0x1014   : > { %v1562_v44 = vmul.f32 0.5, %v1561_v41 }
0x1016   : > { %v1563_v46 = vsub.f32 1.5, %v1562_v44 }
0x1017   : > { %v2297_v47 = vpop.eup %2296 }
0x1018   : > { %v1570_v48 = vmul.f32 %v2297_v47, %v1558_v38  ;;  %v1564_v49 = vmul.f32 %v2295_v33, %v1563_v46  ;;  %vm1576_vm11 = vweird.f32 %v2297_v47 }
0x1019   : > { %vm1577_vm13 = vmor %vm1575_vm12, %vm1576_vm11 }
0x101a   : > { %v1571_v54 = vmul.f32 %v2297_v47, %v1570_v48  ;;  %v1568_v0 = vsel %vm1567_vm10, %v2295_v33, %v1564_v49 }
0x101b   : > { %v1579_v4 = vmul.f32 %v1568_v0, %v1545_v30 }
0x101c   : > { %v1572_v63 = vmul.f32 0.5, %v1571_v54 }
0x101d   : > { %v1587_v5 = vrot.slane %v1579_v4, 1  ;;  %v1581_v15 = vrot.slane %v1579_v4, 7 }
0x101e   : > { %v1573_v1 = vsub.f32 1.5, %v1572_v63 }
0x1020   : > { %v1574_v55 = vmul.f32 %v2297_v47, %v1573_v1 }
0x1022   : > { %v1578_v2 = vsel %vm1577_vm13, %v2297_v47, %v1574_v55 }
0x1023   : > { %v1580_v3 = vmul.f32 %v1578_v2, %v1546_v45 }
0x1025   : > { %v2248_v13 = vpack.i.bf16 %v1580_v3, %v1579_v4  ;;  %v1588_v57 = vrot.slane %v1580_v3, 1  ;;  %v1582_v58 = vrot.slane %v1580_v3, 7 }
0x1027   : > { %2249 = vrot.lane.b32.xlu0 %v2248_v13, %s2321_s26  ;;  %v1590_v11 = vsel %vm704_vm3, %v1588_v57, %v1587_v5  ;;  %v1583_v14 = vsel %vm697_vm2, %v1581_v15, %v1582_v58  ;;  %v1584_v59 = vsel %vm697_vm2, %v1582_v58, %v1581_v15  ;;  %v1589_v61 = vsel %vm704_vm3, %v1587_v5, %v1588_v57  ;;  %v1741_v15 = vld [vmem:[%s2418_s22] sm:$0xff] }
0x1028   : > { %v1592_v60 = vmul.f32 %v2491_v27, %v1590_v11  ;;  %v1585_v12 = vmul.f32 %v2529_v40, %v1584_v59  ;;  %v2307_v40 = vld [vmem:[%s3042_s8] ss:$0 sm:$0xff]  ;;  %vm1712_vm2 = vcmask 64512   ;;  %v2324_v58 = vmov 0  }
0x1029   : > { %2268 = vset.pattern.permute.xlu1 %v2324_v58  ;;  %2269 = vset.pattern.permute.xlu2 %v2324_v58 }
0x102a   : > { %v2253_v62 = vpack.i.bf16 %v1592_v60, %v1589_v61  ;;  %2270 = vset.pattern.permute.xlu0 %v2324_v58 }
0x102c   : > { %2254 = vrot.lane.b32.xlu1 %v2253_v62, %s2322_s27 }
0x1099   : > { %v2250_v17 = vpop.permute.xlu0 %2249 }
0x109a   : > { %v2252_v7 = vunpack.i.h.bf16 %v2250_v17  ;;  %v2251_v10 = vunpack.i.l.bf16 %v2250_v17 }
0x109c   : > { %v1609_v21 = vsel %vm677_vm0, %v1585_v12, %v2251_v10  ;;  %v1610_v34 = vsel %vm677_vm0, %v1583_v14, %v2252_v7 }
0x109e   : > { %v2255_v16 = vpop.permute.xlu1 %2254 }
0x109f   : > { %v2257_v20 = vunpack.i.h.bf16 %v2255_v16  ;;  %v2256_v37 = vunpack.i.l.bf16 %v2255_v16  ;;  %v1742_v16 = vld [vmem:[%s2418_s22 + $0x8] sm:$0xff]  ;;  %s1773_s22 = sld [smem:[#allocation2]] }
0x10a1   : > { %v1611_v27 = vsel %vm727_vm5, %v1609_v21, %v2256_v37  ;;  %v1612_v22 = vsel %vm727_vm5, %v1610_v34, %v2257_v20  ;;  %v1740_v37 = vand.u32 127, %v586_v6 }
0x10a2   : > { %v2075_v23 = vpack.c.bf16 %v1612_v22, %v1611_v27 }
0x10a4   : > { %2076 = vmatmul.msk.bf16.vlgmr.msra.gmra.mxu3 %vm2536_vm7, %v2075_v23 }
0x1127   : > { %v1625_v53 = vpop.f32.mrf.mxu3 }
0x1128   : > { %v1626_v35 = vadd.f32 %v2307_v40, %v1625_v53 }
0x112a   : > { %v1630_v32 = vrot.slane %v1626_v35, 6  ;;  %v1636_v43 = vrot.slane %v1626_v35, 2 }
0x112f   : > { %v1627_v24 = vpop.f32.mrf.mxu3 }
0x1130   : > { %v1628_v30 = vadd.f32 %v2307_v40, %v1627_v24 }
0x1132   : > { %v1631_v25 = vrot.slane %v1628_v30, 6  ;;  %v1637_v42 = vrot.slane %v1628_v30, 2  ;;  %v2258_v45 = vpack.i.bf16 %v1628_v30, %v1626_v35 }
0x1134   : > { %v1633_v50 = vsel %vm954_vm1, %v1631_v25, %v1630_v32  ;;  %2259 = vrot.lane.b32.xlu2 %v2258_v45, %s2321_s26  ;;  %v1639_v56 = vsel %vm961_vm4, %v1637_v42, %v1636_v43  ;;  %v1632_v18 = vsel %vm954_vm1, %v1630_v32, %v1631_v25  ;;  %v1638_v28 = vsel %vm961_vm4, %v1636_v43, %v1637_v42  ;;  %v1765_v45 = vld [vmem:[%s2423_s25] sm:$0xff] }
0x1135   : > { %v1641_v19 = vmul.f32 %v2652_v52, %v1639_v56  ;;  %v1634_v41 = vmul.f32 %v2748_v8, %v1633_v50  ;;  %v2124_v8 = vld [vmem:[%s3045_s11] sm:$0xff]  ;;  %v1766_v50 = vld [vmem:[%s2423_s25 + $0x8] sm:$0xff]  ;;  %vm1776_vm1 = vcmask 7168   ;;  %s2093_s25 = sld [smem:[#allocation2 + $0x1]] }
0x1136   : > { %1705 = vmatpush.bf16.msrb.mxu1 %v2124_v8 }
0x1137   : > { %v2263_v29 = vpack.i.bf16 %v1641_v19, %v1638_v28 }
0x1139   : > { %2264 = vrot.lane.b32.xlu0 %v2263_v29, %s2322_s27 }
0x118e   : > { %v2260_v33 = vpop.permute.xlu2 %2259 }
0x118f   : > { %v2262_v38 = vunpack.i.h.bf16 %v2260_v33  ;;  %v2261_v39 = vunpack.i.l.bf16 %v2260_v33 }
0x1191   : > { %v1658_v52 = vsel %vm677_vm0, %v1634_v41, %v2261_v39  ;;  %v1659_v9 = vsel %vm677_vm0, %v1632_v18, %v2262_v38 }
0x11ab   : > { %v2265_v44 = vpop.permute.xlu0 %2264 }
0x11ac   : > { %v2267_v46 = vunpack.i.h.bf16 %v2265_v44  ;;  %v2266_v47 = vunpack.i.l.bf16 %v2265_v44 }
0x11ae   : > { %v1660_v48 = vsel %vm727_vm5, %v1658_v52, %v2266_v47  ;;  %v1661_v49 = vsel %vm727_vm5, %v1659_v9, %v2267_v46  ;;  %vm1767_vm5 = vcmp.eq.s32.totalorder %v1765_v45, 1 }
0x11af   : > { %v2078_v54 = vpack.c.bf16 %v1661_v49, %v1660_v48  ;;  %v2091_v18 = vsel %vm1767_vm5, 1.0, %v2320_v26 }
0x11b0   : > { %v1793_v19 = vsel %vm1776_vm1, %v2091_v18, 0.0 }
0x11b1   : > { %2079 = vmatmul.msk.bf16.vlgmr.msrb.gmra.mxu0 %vm2536_vm7, %v2078_v54  ;;  %vm1768_vm7 = vcmp.eq.s32.totalorder %v1766_v50, 1 }
0x11b2   : > { %v2092_v56 = vsel %vm1768_vm7, 1.0, %v2320_v26 }
0x11b3   : > { %v1794_v28 = vsel %vm1776_vm1, %v2092_v56, 0.0 }
0x11b4   : > { %v1795_v29 = vadd.f32 %v1794_v28, %v1793_v19 }
0x122e   : > { %v1674_v63 = vpop.f32.mrf.mxu0 }
0x122f   : > { %v1675_v1 = vadd.f32 %v2772_v36, %v1674_v63 }
0x1236   : > { %v1676_v0 = vpop.f32.mrf.mxu0 }
0x1237   : > { %v1677_v55 = vadd.f32 %v2772_v36, %v1676_v0 }
0x1239   : > { %v1679_v4 = vpack.c.bf16 %v1677_v55, %v1675_v1 }
0x123b   : > { %2088 = vmatmul.msk.bf16.vlgmr.msrb.gmra.mxu1 %vm677_vm0, %v1679_v4 }
0x12b8   : > { %v1707_v2 = vpop.f32.mrf.mxu1 }
0x12b9   : > { %v1708_v3 = vadd.f32 %v2275_v51, %v1707_v2 }
0x12bb   : > { %1713 = vst.msk [vmem:[%s2428_s28] sm:$0xff] %vm1712_vm2, %v1708_v3  ;;  %v1715_v5 = vsel %vm1712_vm2, %v1708_v3, -inf }
0x12bc   : > { %1716 = vmax.xlane.f32.xlu0 %v1715_v5 }
0x12c0   : > { %v1709_v13 = vpop.f32.mrf.mxu1 }
0x12c1   : > { %v1710_v57 = vadd.f32 %v2275_v51, %v1709_v13 }
0x12c3   : > { %1714 = vst.msk [vmem:[%s2428_s28 + $0x8] sm:$0xff] %vm1712_vm2, %v1710_v57  ;;  %v1718_v36 = vsel %vm1712_vm2, %v1710_v57, -inf }
0x12c4   : > { %1719 = vmax.xlane.f32.xlu1 %v1718_v36 }
0x12dd   : > { %1744 = vperm.xlu1 %2268, %v1741_v15  }
0x132f   : > { %v1717_v11 = vpop.xlane.xlu0 %1716 }
0x1330   : > { %v1721_v14 = vsub.f32 %v1708_v3, %v1717_v11 }
0x1332   : > { %v1723_v59 = vmul.f32 1.442695, %v1721_v14 }
0x1334   : > { %2298 = vpow2.f32 %v1723_v59 }
0x1337   : > { %v1720_v60 = vpop.xlane.xlu1 %1719 }
0x1338   : > { %v1722_v61 = vsub.f32 %v1710_v57, %v1720_v60 }
0x133a   : > { %v2299_v62 = vpop.eup %2298  ;;  %v1725_v17 = vmul.f32 1.442695, %v1722_v61 }
0x133b   : > { %v1727_v7 = vsel %vm1712_vm2, %v2299_v62, 0.0 }
0x133c   : > { %2300 = vpow2.f32 %v1725_v17  ;;  %1728 = vadd.xlane.f32.xlu2 %v1727_v7 }
0x1342   : > { %v2301_v10 = vpop.eup %2300 }
0x1343   : > { %v1730_v12 = vsel %vm1712_vm2, %v2301_v10, 0.0 }
0x1344   : > { %1731 = vadd.xlane.f32.xlu0 %v1730_v12 }
0x134f   : > { %v1745_v21 = vpop.permute.xlu1 %1744 }
0x1350   : > { %vm1749_vm0 = vcmp.eq.s32.totalorder %v1740_v37, %v1745_v21 }
0x1351   : > { %v2089_v23 = vsel %vm1749_vm0, 1.0, %v2320_v26 }
0x1354   : > { %1747 = vperm.xlu2 %2269, %v1742_v16  }
0x137d   : > { %1796 = vadd.xlane.f32.xlu2 %v1795_v29 }
0x13af   : > { %v1729_v20 = vpop.xlane.xlu2 %1728 }
0x13b0   : > { %2302 = vlog2.f32 %v1729_v20 }
0x13b6   : > { %v2303_v34 = vpop.eup %2302 }
0x13b7   : > { %v1734_v27 = vmul.f32 0.6931472, %v2303_v34  ;;  %v1732_v22 = vpop.xlane.xlu0 %1731  ;;  %v1748_v40 = vpop.permute.xlu2 %1747 }
0x13b8   : > { %2304 = vlog2.f32 %v1732_v22  ;;  %vm1750_vm3 = vcmp.eq.s32.totalorder %v1740_v37, %v1748_v40 }
0x13b9   : > { %v1737_v53 = vsub.f32 %v1721_v14, %v1734_v27  ;;  %v2090_v6 = vsel %vm1750_vm3, 1.0, %v2320_v26 }
0x13bb   : > { %v1755_v35 = vmul.f32 %v2089_v23, %v1737_v53 }
0x13bd   : > { %v1757_v24 = vsel %vm1712_vm2, %v1755_v35, 0.0 }
0x13be   : > { %v2305_v30 = vpop.eup %2304  ;;  %1758 = vadd.xlane.f32.xlu0 %v1757_v24 }
0x13bf   : > { %v1736_v32 = vmul.f32 0.6931472, %v2305_v30 }
0x13c1   : > { %v1738_v43 = vsub.f32 %v1722_v61, %v1736_v32 }
0x13c3   : > { %v1756_v25 = vmul.f32 %v2090_v6, %v1738_v43 }
0x13c5   : > { %v1760_v42 = vsel %vm1712_vm2, %v1756_v25, 0.0 }
0x13c6   : > { %1761 = vadd.xlane.f32.xlu0 %v1760_v42 }
0x13f0   : > { %v1797_v9 = vpop.xlane.xlu2 %1796 }
0x13f1   : > { %v1798_v48 = vrot.slane %v1797_v9, 4 }
0x13f3   : > { %v1799_v49 = vadd.f32 %v1798_v48, %v1797_v9 }
0x13f5   : > { %v1800_v54 = vrot.slane %v1799_v49, 2 }
0x13f7   : > { %v1801_v0 = vadd.f32 %v1800_v54, %v1799_v49 }
0x13f9   : > { %v1802_v4 = vrot.slane %v1801_v0, 1 }
0x13fb   : > { %v1803_v3 = vadd.f32 %v1802_v4, %v1801_v0 }
0x1431   : > { %v1759_v31 = vpop.xlane.xlu0 %1758 }
0x1432   : > { %v1763_v33 = vsub.f32 0.0, %v1759_v31 }
0x1434   : > { %v1774_v39 = vmul.f32 %v2091_v18, %v1763_v33 }
0x1436   : > { %v1777_v46 = vsel %vm1776_vm1, %v1774_v39, 0.0 }
0x1439   : > { %v1762_v38 = vpop.xlane.xlu0 %1761 }
0x143a   : > { %v1764_v41 = vsub.f32 0.0, %v1762_v38 }
0x143c   : > { %v1775_v44 = vmul.f32 %v2092_v56, %v1764_v41 }
0x143e   : > { %v1778_v47 = vsel %vm1776_vm1, %v1775_v44, 0.0 }
0x143f   : > { %v1779_v52 = vadd.f32 %v1778_v47, %v1777_v46 }
0x1441   : > { %1780 = vadd.xlane.f32.xlu0 %v1779_v52 }
0x14b4   : > { %v1781_v26 = vpop.xlane.xlu0 %1780 }
0x14b5   : > { %v1782_v8 = vrot.slane %v1781_v26, 4 }
0x14b7   : > { %v1783_v63 = vadd.f32 %v1782_v8, %v1781_v26 }
0x14b9   : > { %v1784_v1 = vrot.slane %v1783_v63, 2 }
0x14bb   : > { %v1785_v55 = vadd.f32 %v1784_v1, %v1783_v63 }
0x14bd   : > { %v1786_v51 = vrot.slane %v1785_v55, 1 }
0x14bf   : > { %v1787_v2 = vadd.f32 %v1786_v51, %v1785_v55 }
0x14c1   : > { %2126 = vpush %v1787_v2 }
0x14c2   : > { %2128 = vpush %v1803_v3 }
0x14f2   : > { %s2127_s28 = spop %2126  ;;  %1811 = sbr.rel (%p2094_p5) target bundleno = 5446 (0x1546), region = 80 }
0x14f3   : > { %s1789_s24 = sadd.f32 %s2127_s28, %s1773_s22  ;;  %s2129_s16 = spop %2128 }
0x14f4   : > { %s1805_s15 = sadd.f32 %s2129_s16, %s2093_s25 }
0x14f5   : > { %1791 = sst [smem:[#allocation2]] %s1789_s24 }
0x14f6   : > { %1807 = sst [smem:[#allocation2 + $0x1]] %s1805_s15 }
0x14f7   : > { %s2095_s19 = sld [smem:[#allocation2 + $0x1]] }
0x14f8   : > { %s1812_s30 = sld [smem:[#allocation2]] }
0x14fd   : > { %s1814_s18 = smax.f32 %s2325_s17, %s2095_s19 }
0x14fe   : > { %v1815_v5 = vstv %s1814_s18 }
0x14ff   : > { %2308 = vrcp.f32 %v1815_v5  ;;  %v1827_v36 = vand.u32 2147483648, %v1815_v5  ;;  %vm1821_vm4 = vweird.f32 %v1815_v5  ;;  %v1825_v58 = vand.u32 2147483647, %v1815_v5 }
0x1501   : > { %v1828_v14 = vor.u32 1.1754944e-38, %v1827_v36  ;;  %vm1826_vm6 = vcmp.eq.f32.partialorder %v1825_v58, 8.507059e+37 }
0x1505   : > { %v2309_v13 = vpop.eup %2308 }
0x1506   : > { %v1817_v57 = vmul.f32 %v2309_v13, %v1815_v5  ;;  %vm1822_vm14 = vweird.f32 %v2309_v13 }
0x1507   : > { %vm1823_vm15 = vmor %vm1821_vm4, %vm1822_vm14 }
0x1508   : > { %v1818_v15 = vsub.f32 1.0, %v1817_v57 }
0x150a   : > { %v1819_v11 = vmul.f32 %v2309_v13, %v1818_v15 }
0x150c   : > { %v1820_v59 = vadd.f32 %v2309_v13, %v1819_v11 }
0x150e   : > { %v1824_v60 = vsel %vm1823_vm15, %v2309_v13, %v1820_v59 }
0x150f   : > { %v1829_v61 = vsel %vm1826_vm6, %v1828_v14, %v1824_v60 }
0x1510   : > { %2130 = vpush %v1829_v61 }
0x1541   : > { %s2131_s20 = spop %2130 }
0x1542   : > { %s1831_s26 = smul.f32 %s2131_s20, %s1812_s30 }
0x1544   : > { %v1832_v62 = vstv %s1831_s26 }
0x1545   : > { %1834 = vst [vmem:[%s3048_s14] sm:$0xff] %v1832_v62 }
0x1546 PF: > { %s25_s29 = sadd.s32 1, %s2316_s29  }
0x1547   : > { %p22_p6 = scmp.ge.s32.totalorder %s25_s29, 4  }
0x1549   :  { %24 = sbr.rel (!%p22_p6) target bundleno = 1 (0x1), region = 128 }

</bundles_post_ra>
